<compile_context>
chip_gen: v5e
topology: v5e:2x2
jax: 0.10.0
libtpu: 0.0.40
codegen_flags: <defaults>
</compile_context>

<pallas_src>
import functools

import jax
import jax.numpy as jnp
import numpy as np
from jax import lax
from jax.experimental import pallas as pl
from jax.experimental.pallas import tpu as pltpu


# ----------------------------------------------------------------------------
# Fused Pallas kernel (one batch element per grid step)
# ----------------------------------------------------------------------------
def _fused_upblock_kernel(x_ref, br_ref, wup_ref, bup_ref, s_ref, e_ref,
                          w1_ref, b1_ref, w2_ref, b2_ref, o_ref,
                          *, slope, hin, win):
    """ConvT(2,2) -> concat(bridge) -> (3x3 conv, pad=1, LeakyReLU) x2.

    Layout: channels on sublanes, flattened spatial on lanes (== flat NCHW).
      x_ref   : (Cin, Hin*Win)
      br_ref  : (Cbr, H2*W2)
      wup_ref : (4*Cout, Cin)       rows ordered (a, b, co); (a,b) = 2x2 subpixel
      bup_ref : (Cout, 1)
      s_ref   : (4*Hin*Win, H2*W2)  0/1 scatter: phase sub-image -> upsampled flat
      e_ref   : (H2*W2, Lext)       0/1 embed: clean flat -> zero-padded flat
                                    (row stride W2, one pad row above/below,
                                     1-element margins; Lext = (H2+2)*W2 + 2)
      w1_ref  : (Cout, 9*Ccat)      im2col weights, columns ordered (ky, kx, c)
      w2_ref  : (Cout, 9*Cout)
      o_ref   : (Cout, H2*W2)
    """
    f32 = jnp.float32
    H2, W2 = 2 * hin, 2 * win
    HW = H2 * W2
    g = hin * win
    cout = o_ref.shape[0]

    # Edge-wrap masks for the 3x3 taps.  The padded image is stored flat with
    # row stride W2 (no column padding), so kx=0 / kx=2 taps wrap into the
    # previous/next row at the left/right image edge and must be zeroed.
    col = lax.broadcasted_iota(jnp.int32, (1, HW), 1)
    q = col % W2
    mask_l = (q != 0).astype(f32)
    mask_r = (q != W2 - 1).astype(f32)

    emb = e_ref[...]                                    # (HW, Lext)

    # ---- ConvTranspose2d(k=2, s=2): channel matmul + subpixel scatter (MXU) ----
    y = jnp.dot(wup_ref[...], x_ref[...], preferred_element_type=f32)   # (4*Cout, g)
    up = jnp.dot(y[0:cout, :], s_ref[0:g, :], preferred_element_type=f32)
    for ab in range(1, 4):
        up = up + jnp.dot(y[ab * cout:(ab + 1) * cout, :],
                          s_ref[ab * g:(ab + 1) * g, :],
                          preferred_element_type=f32)
    up = up + bup_ref[...]                              # (Cout, HW)

    # channel concat [up, bridge]  (sublane concat, stays in VMEM)
    cat = jnp.concatenate([up, br_ref[...].astype(f32)], axis=0)   # (Ccat, HW)

    # ---- 3x3 conv (pad=1) + activation as ONE im2col matmul --------------------
    def conv3x3_act(src, w_ref, b_ref):
        ext = jnp.dot(src, emb, preferred_element_type=f32)        # zero-padded flat
        taps = []
        for ky in range(3):
            for kx in range(3):
                start = ky * W2 + kx                               # static offsets
                t = ext[:, start:start + HW]
                if kx == 0:
                    t = t * mask_l
                elif kx == 2:
                    t = t * mask_r
                taps.append(t)
        xcol = jnp.concatenate(taps, axis=0)                       # (9*C, HW)
        h = jnp.dot(w_ref[...], xcol, preferred_element_type=f32) + b_ref[...]
        if slope == 0:
            return jnp.maximum(h, 0.0)
        return jnp.where(h > 0, h, slope * h)

    h1 = conv3x3_act(cat, w1_ref, b1_ref)
    h2 = conv3x3_act(h1, w2_ref, b2_ref)
    o_ref[...] = h2.astype(o_ref.dtype)


# ----------------------------------------------------------------------------
# Constant 0/1 matrices (built at trace time; depend only on static shapes)
# ----------------------------------------------------------------------------
def _scatter_matrix(hin, win):
    """S[(a*2+b)*Hin*Win + i*Win + j, (2i+a)*W2 + (2j+b)] = 1."""
    H2, W2 = 2 * hin, 2 * win
    s = np.zeros((4 * hin * win, H2 * W2), np.float32)
    for a in range(2):
        for b in range(2):
            for i in range(hin):
                for j in range(win):
                    s[(a * 2 + b) * hin * win + i * win + j,
                      (2 * i + a) * W2 + (2 * j + b)] = 1.0
    return jnp.asarray(s)


def _embed_matrix(h, w):
    """E[f, f + w + 1] = 1 : clean (h*w) -> padded flat of length (h+2)*w + 2."""
    hw = h * w
    lext = (h + 2) * w + 2
    e = np.zeros((hw, lext), np.float32)
    e[np.arange(hw), np.arange(hw) + w + 1] = 1.0
    return jnp.asarray(e)


# ----------------------------------------------------------------------------
# Public wrapper (NCHW in / NCHW out, like PyTorch)
# ----------------------------------------------------------------------------
@functools.partial(jax.jit, static_argnames=("slope",))
def unet_up_block(x_nchw, bridge_nchw, params, slope=0.2):
    """Forward of UNetUpBlock (padding=True, batch_norm=False)."""
    n, cin, hin, win = x_nchw.shape
    h2, w2 = 2 * hin, 2 * win
    hw = h2 * w2
    cout = params["up_w"].shape[1]
    cbr = bridge_nchw.shape[1]
    ccat = cout + cbr
    g = hin * win

    # flattened-NCHW views: channels -> sublanes, flat spatial -> lanes (free reshapes)
    xf = x_nchw.reshape(n, cin, g)
    brf = bridge_nchw.reshape(n, cbr, hw)

    # weight / constant prep (tiny)
    wup2 = jnp.transpose(params["up_w"], (2, 3, 1, 0)).reshape(4 * cout, cin)
    bup = params["up_b"].reshape(cout, 1)
    w1m = jnp.transpose(params["w1"], (0, 2, 3, 1)).reshape(cout, 9 * ccat)
    b1 = params["b1"].reshape(cout, 1)
    w2m = jnp.transpose(params["w2"], (0, 2, 3, 1)).reshape(cout, 9 * cout)
    b2 = params["b2"].reshape(cout, 1)
    s_mat = _scatter_matrix(hin, win)        # (4*g, hw)
    e_mat = _embed_matrix(h2, w2)            # (hw, lext)
    lext = e_mat.shape[1]

    kern = functools.partial(_fused_upblock_kernel, slope=slope, hin=hin, win=win)

    def full(shape):
        return pl.BlockSpec(shape, lambda i: (0,) * len(shape))

    def batched(c, l):
        return pl.BlockSpec((None, c, l), lambda i: (i, 0, 0))

    out = pl.pallas_call(
        kern,
        out_shape=jax.ShapeDtypeStruct((n, cout, hw), x_nchw.dtype),
        grid=(n,),
        in_specs=[
            batched(cin, g),            # x
            batched(cbr, hw),           # bridge
            full((4 * cout, cin)),      # up weights
            full((cout, 1)),            # up bias
            full((4 * g, hw)),          # S (subpixel scatter)
            full((hw, lext)),           # E (pad embed)
            full((cout, 9 * ccat)),     # conv1 im2col weights
            full((cout, 1)),            # b1
            full((cout, 9 * cout)),     # conv2 im2col weights
            full((cout, 1)),            # b2
        ],
        out_specs=batched(cout, hw),
        compiler_params=pltpu.CompilerParams(
            dimension_semantics=("parallel",)),
    )(xf, brf, wup2, bup, s_mat, e_mat, w1m, b1, w2m, b2)

    return out.reshape(n, cout, h2, w2)


# ----------------------------------------------------------------------------
# Pure-JAX reference (lax convs, NCHW like PyTorch) for validation
# ----------------------------------------------------------------------------
def reference_forward(x, bridge, p, slope=0.2):
    # ConvTranspose2d(k=2, s=2, pad=0) == conv(dilate(x,2), flip(W), pad=1)
    w_conv = jnp.transpose(jnp.flip(p["up_w"], (2, 3)), (1, 0, 2, 3))  # OIHW
    up = lax.conv_general_dilated(
        x, w_conv, window_strides=(1, 1), padding=[(1, 1), (1, 1)],
        lhs_dilation=(2, 2), dimension_numbers=("NCHW", "OIHW", "NCHW"))
    up = up + p["up_b"][None, :, None, None]

    out = jnp.concatenate([up, bridge], axis=1)

    def conv_lrelu(h, w, b):
        h = lax.conv_general_dilated(
            h, w, window_strides=(1, 1), padding=[(1, 1), (1, 1)],
            dimension_numbers=("NCHW", "OIHW", "NCHW"))
        h = h + b[None, :, None, None]
        return jnp.where(h > 0, h, slope * h)

    out = conv_lrelu(out, p["w1"], p["b1"])
    out = conv_lrelu(out, p["w2"], p["b2"])
    return out


# ----------------------------------------------------------------------------
# Deterministic parameter init (PyTorch-like uniform(-1/sqrt(fan_in), +))
# ----------------------------------------------------------------------------
def init_params(key, in_size, out_size):
    ks = jax.random.split(key, 6)

    def u(k, shape, fan_in):
        s = 1.0 / np.sqrt(fan_in)
        return jax.random.uniform(k, shape, jnp.float32, -s, s)

    return {
        # ConvTranspose2d weight layout: (in_ch, out_ch, kH, kW); has bias
        "up_w": u(ks[0], (in_size, out_size, 2, 2), in_size * 4),
        "up_b": u(ks[1], (out_size,), in_size * 4),
        # Conv2d weight layout: (out_ch, in_ch, 3, 3); has bias
        "w1": u(ks[2], (out_size, in_size, 3, 3), in_size * 9),
        "b1": u(ks[3], (out_size,), in_size * 9),
        "w2": u(ks[4], (out_size, out_size, 3, 3), out_size * 9),
        "b2": u(ks[5], (out_size,), out_size * 9),
    }


if __name__ == "__main__":
    in_size, out_size = 8, 4
    N, H, W = 2, 8, 8
    slope = 0.2  # LeakyReLU slope; padding=True
    # TODO(synk): batch_norm=True branch (nn.BatchNorm2d) not implemented in-kernel.

    key = jax.random.PRNGKey(0)
    kx, kb, kp = jax.random.split(key, 3)
    x = jax.random.normal(kx, (N, in_size, H, W), jnp.float32)
    bridge = jax.random.normal(kb, (N, in_size - out_size, 2 * H, 2 * W), jnp.float32)
    params = init_params(kp, in_size, out_size)

    out = unet_up_block(x, bridge, params, slope=slope)
    out = jax.block_until_ready(out)
    assert out.shape == (N, out_size, 2 * H, 2 * W), out.shape

    ref = jax.block_until_ready(reference_forward(x, bridge, params, slope=slope))
    np.testing.assert_allclose(np.asarray(out), np.asarray(ref), rtol=2e-2, atol=2e-2)

    print("KERNEL_OK")
</pallas_src>

<mosaic_0001>
module attributes {stable_mosaic.version = 11 : i64} {
  func.func @_fused_upblock_kernel(%arg0: i32, %arg1: memref<1x8x64xf32, #tpu.memory_space<vmem>>, %arg2: memref<1x4x256xf32, #tpu.memory_space<vmem>>, %arg3: memref<16x8xf32, #tpu.memory_space<vmem>>, %arg4: memref<4x1xf32, #tpu.memory_space<vmem>>, %arg5: memref<256x256xf32, #tpu.memory_space<vmem>>, %arg6: memref<256x290xf32, #tpu.memory_space<vmem>>, %arg7: memref<4x72xf32, #tpu.memory_space<vmem>>, %arg8: memref<4x1xf32, #tpu.memory_space<vmem>>, %arg9: memref<4x36xf32, #tpu.memory_space<vmem>>, %arg10: memref<4x1xf32, #tpu.memory_space<vmem>>, %arg11: memref<1x4x256xf32, #tpu.memory_space<vmem>>) attributes {dimension_semantics = [#tpu.dimension_semantics<parallel>], iteration_bounds = array<i64: 2>, scalar_prefetch = 0 : i64, scratch_operands = 0 : i64, tpu.core_type = #tpu.core_type<tc>, window_params = [{transform_indices = @transform_0, window_bounds = array<i64: 1, 8, 64>}, {transform_indices = @transform_1, window_bounds = array<i64: 1, 4, 256>}, {pipeline_mode = #tpu.pipeline_mode<synchronous>, transform_indices = @transform_2, window_bounds = array<i64: 16, 8>}, {pipeline_mode = #tpu.pipeline_mode<synchronous>, transform_indices = @transform_3, window_bounds = array<i64: 4, 1>}, {pipeline_mode = #tpu.pipeline_mode<synchronous>, transform_indices = @transform_4, window_bounds = array<i64: 256, 256>}, {pipeline_mode = #tpu.pipeline_mode<synchronous>, transform_indices = @transform_5, window_bounds = array<i64: 256, 290>}, {pipeline_mode = #tpu.pipeline_mode<synchronous>, transform_indices = @transform_6, window_bounds = array<i64: 4, 72>}, {pipeline_mode = #tpu.pipeline_mode<synchronous>, transform_indices = @transform_7, window_bounds = array<i64: 4, 1>}, {pipeline_mode = #tpu.pipeline_mode<synchronous>, transform_indices = @transform_8, window_bounds = array<i64: 4, 36>}, {pipeline_mode = #tpu.pipeline_mode<synchronous>, transform_indices = @transform_9, window_bounds = array<i64: 4, 1>}, {transform_indices = @transform_10, window_bounds = array<i64: 1, 4, 256>}]} {
    %0 = tpu.iota {dimensions = array<i32: 1>} : vector<1x256xi32>
    %c16_i32 = arith.constant 16 : i32
    %c0_i32 = arith.constant 0 : i32
    %1 = arith.cmpi eq, %c16_i32, %c0_i32 : i32
    %c1_i32 = arith.constant 1 : i32
    %2 = arith.select %1, %c1_i32, %c16_i32 : i32
    %3 = vector.broadcast %2 : i32 to vector<1x256xi32>
    %4 = arith.remsi %0, %3 : vector<1x256xi32>
    %c0_i32_0 = arith.constant 0 : i32
    %5 = vector.broadcast %c0_i32_0 : i32 to vector<1x256xi32>
    %6 = arith.cmpi ne, %4, %5 : vector<1x256xi32>
    %c0_i32_1 = arith.constant 0 : i32
    %7 = vector.broadcast %c0_i32_1 : i32 to vector<1x256xi32>
    %8 = arith.cmpi slt, %4, %7 : vector<1x256xi32>
    %c0_i32_2 = arith.constant 0 : i32
    %9 = arith.cmpi slt, %2, %c0_i32_2 : i32
    %10 = vector.broadcast %9 : i1 to vector<1x256xi1>
    %11 = vector.broadcast %10 : vector<1x256xi1> to vector<1x256xi1>
    %12 = arith.xori %8, %11 : vector<1x256xi1>
    %13 = arith.andi %12, %6 : vector<1x256xi1>
    %14 = vector.broadcast %2 : i32 to vector<1x256xi32>
    %15 = arith.addi %4, %14 : vector<1x256xi32>
    %16 = arith.select %13, %15, %4 : vector<1x256xi1>, vector<1x256xi32>
    %c0_i32_3 = arith.constant 0 : i32
    %17 = vector.broadcast %c0_i32_3 : i32 to vector<1x256xi32>
    %18 = arith.cmpi ne, %16, %17 : vector<1x256xi32>
    %19 = arith.extui %18 : vector<1x256xi1> to vector<1x256xi32>
    %20 = arith.sitofp %19 : vector<1x256xi32> to vector<1x256xf32>
    %c15_i32 = arith.constant 15 : i32
    %21 = vector.broadcast %c15_i32 : i32 to vector<1x256xi32>
    %22 = arith.cmpi ne, %16, %21 : vector<1x256xi32>
    %23 = arith.extui %22 : vector<1x256xi1> to vector<1x256xi32>
    %24 = arith.sitofp %23 : vector<1x256xi32> to vector<1x256xf32>
    %c0 = arith.constant 0 : index
    %c0_4 = arith.constant 0 : index
    %25 = vector.load %arg6[%c0, %c0_4] : memref<256x290xf32, #tpu.memory_space<vmem>>, vector<256x290xf32>
    %c0_5 = arith.constant 0 : index
    %c0_6 = arith.constant 0 : index
    %26 = vector.load %arg3[%c0_5, %c0_6] : memref<16x8xf32, #tpu.memory_space<vmem>>, vector<16x8xf32>
    %c0_7 = arith.constant 0 : index
    %c0_8 = arith.constant 0 : index
    %c0_9 = arith.constant 0 : index
    %27 = vector.load %arg1[%c0_7, %c0_8, %c0_9] : memref<1x8x64xf32, #tpu.memory_space<vmem>>, vector<1x8x64xf32>
    %28 = vector.shape_cast %27 : vector<1x8x64xf32> to vector<8x64xf32>
    %cst = arith.constant dense<0.000000e+00> : vector<16x64xf32>
    %29 = tpu.matmul %26, %28, %cst {dimension_numbers = #tpu.dot_dimension_numbers<[1], [0], [0], [1], [0, 0, 1, 1], [], []>} : vector<16x8xf32>, vector<8x64xf32>, vector<16x64xf32> -> vector<16x64xf32>
    %30 = vector.extract_strided_slice %29 {offsets = [0, 0], sizes = [4, 64], strides = [1, 1]} : vector<16x64xf32> to vector<4x64xf32>
    %c0_10 = arith.constant 0 : index
    %c0_11 = arith.constant 0 : index
    %31 = vector.load %arg5[%c0_10, %c0_11] : memref<256x256xf32, #tpu.memory_space<vmem>>, vector<64x256xf32>
    %cst_12 = arith.constant dense<0.000000e+00> : vector<4x256xf32>
    %32 = tpu.matmul %30, %31, %cst_12 {dimension_numbers = #tpu.dot_dimension_numbers<[1], [0], [0], [1], [0, 0, 1, 1], [], []>} : vector<4x64xf32>, vector<64x256xf32>, vector<4x256xf32> -> vector<4x256xf32>
    %33 = vector.extract_strided_slice %29 {offsets = [4, 0], sizes = [4, 64], strides = [1, 1]} : vector<16x64xf32> to vector<4x64xf32>
    %c64 = arith.constant 64 : index
    %c0_13 = arith.constant 0 : index
    %34 = vector.load %arg5[%c64, %c0_13] : memref<256x256xf32, #tpu.memory_space<vmem>>, vector<64x256xf32>
    %cst_14 = arith.constant dense<0.000000e+00> : vector<4x256xf32>
    %35 = tpu.matmul %33, %34, %cst_14 {dimension_numbers = #tpu.dot_dimension_numbers<[1], [0], [0], [1], [0, 0, 1, 1], [], []>} : vector<4x64xf32>, vector<64x256xf32>, vector<4x256xf32> -> vector<4x256xf32>
    %36 = arith.addf %32, %35 : vector<4x256xf32>
    %37 = vector.extract_strided_slice %29 {offsets = [8, 0], sizes = [4, 64], strides = [1, 1]} : vector<16x64xf32> to vector<4x64xf32>
    %c128 = arith.constant 128 : index
    %c0_15 = arith.constant 0 : index
    %38 = vector.load %arg5[%c128, %c0_15] : memref<256x256xf32, #tpu.memory_space<vmem>>, vector<64x256xf32>
    %cst_16 = arith.constant dense<0.000000e+00> : vector<4x256xf32>
    %39 = tpu.matmul %37, %38, %cst_16 {dimension_numbers = #tpu.dot_dimension_numbers<[1], [0], [0], [1], [0, 0, 1, 1], [], []>} : vector<4x64xf32>, vector<64x256xf32>, vector<4x256xf32> -> vector<4x256xf32>
    %40 = arith.addf %36, %39 : vector<4x256xf32>
    %41 = vector.extract_strided_slice %29 {offsets = [12, 0], sizes = [4, 64], strides = [1, 1]} : vector<16x64xf32> to vector<4x64xf32>
    %c192 = arith.constant 192 : index
    %c0_17 = arith.constant 0 : index
    %42 = vector.load %arg5[%c192, %c0_17] : memref<256x256xf32, #tpu.memory_space<vmem>>, vector<64x256xf32>
    %cst_18 = arith.constant dense<0.000000e+00> : vector<4x256xf32>
    %43 = tpu.matmul %41, %42, %cst_18 {dimension_numbers = #tpu.dot_dimension_numbers<[1], [0], [0], [1], [0, 0, 1, 1], [], []>} : vector<4x64xf32>, vector<64x256xf32>, vector<4x256xf32> -> vector<4x256xf32>
    %44 = arith.addf %40, %43 : vector<4x256xf32>
    %c0_19 = arith.constant 0 : index
    %c0_20 = arith.constant 0 : index
    %45 = vector.load %arg4[%c0_19, %c0_20] : memref<4x1xf32, #tpu.memory_space<vmem>>, vector<4x1xf32>
    %46 = vector.broadcast %45 : vector<4x1xf32> to vector<4x256xf32>
    %47 = arith.addf %44, %46 : vector<4x256xf32>
    %c0_21 = arith.constant 0 : index
    %c0_22 = arith.constant 0 : index
    %c0_23 = arith.constant 0 : index
    %48 = vector.load %arg2[%c0_21, %c0_22, %c0_23] : memref<1x4x256xf32, #tpu.memory_space<vmem>>, vector<1x4x256xf32>
    %49 = vector.shape_cast %48 : vector<1x4x256xf32> to vector<4x256xf32>
    %50 = tpu.concatenate %47, %49 in 0 : vector<4x256xf32>, vector<4x256xf32> -> vector<8x256xf32>
    %cst_24 = arith.constant dense<0.000000e+00> : vector<8x290xf32>
    %51 = tpu.matmul %50, %25, %cst_24 {dimension_numbers = #tpu.dot_dimension_numbers<[1], [0], [0], [1], [0, 0, 1, 1], [], []>} : vector<8x256xf32>, vector<256x290xf32>, vector<8x290xf32> -> vector<8x290xf32>
    %52 = vector.extract_strided_slice %51 {offsets = [0, 0], sizes = [8, 256], strides = [1, 1]} : vector<8x290xf32> to vector<8x256xf32>
    %53 = vector.broadcast %20 : vector<1x256xf32> to vector<8x256xf32>
    %54 = arith.mulf %52, %53 : vector<8x256xf32>
    %55 = vector.extract_strided_slice %51 {offsets = [0, 1], sizes = [8, 256], strides = [1, 1]} : vector<8x290xf32> to vector<8x256xf32>
    %56 = vector.extract_strided_slice %51 {offsets = [0, 2], sizes = [8, 256], strides = [1, 1]} : vector<8x290xf32> to vector<8x256xf32>
    %57 = vector.broadcast %24 : vector<1x256xf32> to vector<8x256xf32>
    %58 = arith.mulf %56, %57 : vector<8x256xf32>
    %59 = vector.extract_strided_slice %51 {offsets = [0, 16], sizes = [8, 256], strides = [1, 1]} : vector<8x290xf32> to vector<8x256xf32>
    %60 = vector.broadcast %20 : vector<1x256xf32> to vector<8x256xf32>
    %61 = arith.mulf %59, %60 : vector<8x256xf32>
    %62 = vector.extract_strided_slice %51 {offsets = [0, 17], sizes = [8, 256], strides = [1, 1]} : vector<8x290xf32> to vector<8x256xf32>
    %63 = vector.extract_strided_slice %51 {offsets = [0, 18], sizes = [8, 256], strides = [1, 1]} : vector<8x290xf32> to vector<8x256xf32>
    %64 = vector.broadcast %24 : vector<1x256xf32> to vector<8x256xf32>
    %65 = arith.mulf %63, %64 : vector<8x256xf32>
    %66 = vector.extract_strided_slice %51 {offsets = [0, 32], sizes = [8, 256], strides = [1, 1]} : vector<8x290xf32> to vector<8x256xf32>
    %67 = vector.broadcast %20 : vector<1x256xf32> to vector<8x256xf32>
    %68 = arith.mulf %66, %67 : vector<8x256xf32>
    %69 = vector.extract_strided_slice %51 {offsets = [0, 33], sizes = [8, 256], strides = [1, 1]} : vector<8x290xf32> to vector<8x256xf32>
    %70 = vector.extract_strided_slice %51 {offsets = [0, 34], sizes = [8, 256], strides = [1, 1]} : vector<8x290xf32> to vector<8x256xf32>
    %71 = vector.broadcast %24 : vector<1x256xf32> to vector<8x256xf32>
    %72 = arith.mulf %70, %71 : vector<8x256xf32>
    %73 = tpu.concatenate %54, %55, %58, %61, %62, %65, %68, %69, %72 in 0 : vector<8x256xf32>, vector<8x256xf32>, vector<8x256xf32>, vector<8x256xf32>, vector<8x256xf32>, vector<8x256xf32>, vector<8x256xf32>, vector<8x256xf32>, vector<8x256xf32> -> vector<72x256xf32>
    %c0_25 = arith.constant 0 : index
    %c0_26 = arith.constant 0 : index
    %74 = vector.load %arg7[%c0_25, %c0_26] : memref<4x72xf32, #tpu.memory_space<vmem>>, vector<4x72xf32>
    %cst_27 = arith.constant dense<0.000000e+00> : vector<4x256xf32>
    %75 = tpu.matmul %74, %73, %cst_27 {dimension_numbers = #tpu.dot_dimension_numbers<[1], [0], [0], [1], [0, 0, 1, 1], [], []>} : vector<4x72xf32>, vector<72x256xf32>, vector<4x256xf32> -> vector<4x256xf32>
    %c0_28 = arith.constant 0 : index
    %c0_29 = arith.constant 0 : index
    %76 = vector.load %arg8[%c0_28, %c0_29] : memref<4x1xf32, #tpu.memory_space<vmem>>, vector<4x1xf32>
    %77 = vector.broadcast %76 : vector<4x1xf32> to vector<4x256xf32>
    %78 = arith.addf %75, %77 : vector<4x256xf32>
    %cst_30 = arith.constant 0.000000e+00 : f32
    %79 = vector.broadcast %cst_30 : f32 to vector<4x256xf32>
    %80 = arith.cmpf ogt, %78, %79 : vector<4x256xf32>
    %cst_31 = arith.constant 2.000000e-01 : f32
    %81 = vector.broadcast %cst_31 : f32 to vector<4x256xf32>
    %82 = arith.mulf %81, %78 : vector<4x256xf32>
    %83 = arith.select %80, %78, %82 : vector<4x256xi1>, vector<4x256xf32>
    %cst_32 = arith.constant dense<0.000000e+00> : vector<4x290xf32>
    %84 = tpu.matmul %83, %25, %cst_32 {dimension_numbers = #tpu.dot_dimension_numbers<[1], [0], [0], [1], [0, 0, 1, 1], [], []>} : vector<4x256xf32>, vector<256x290xf32>, vector<4x290xf32> -> vector<4x290xf32>
    %85 = vector.extract_strided_slice %84 {offsets = [0, 0], sizes = [4, 256], strides = [1, 1]} : vector<4x290xf32> to vector<4x256xf32>
    %86 = vector.broadcast %20 : vector<1x256xf32> to vector<4x256xf32>
    %87 = arith.mulf %85, %86 : vector<4x256xf32>
    %88 = vector.extract_strided_slice %84 {offsets = [0, 1], sizes = [4, 256], strides = [1, 1]} : vector<4x290xf32> to vector<4x256xf32>
    %89 = vector.extract_strided_slice %84 {offsets = [0, 2], sizes = [4, 256], strides = [1, 1]} : vector<4x290xf32> to vector<4x256xf32>
    %90 = vector.broadcast %24 : vector<1x256xf32> to vector<4x256xf32>
    %91 = arith.mulf %89, %90 : vector<4x256xf32>
    %92 = vector.extract_strided_slice %84 {offsets = [0, 16], sizes = [4, 256], strides = [1, 1]} : vector<4x290xf32> to vector<4x256xf32>
    %93 = vector.broadcast %20 : vector<1x256xf32> to vector<4x256xf32>
    %94 = arith.mulf %92, %93 : vector<4x256xf32>
    %95 = vector.extract_strided_slice %84 {offsets = [0, 17], sizes = [4, 256], strides = [1, 1]} : vector<4x290xf32> to vector<4x256xf32>
    %96 = vector.extract_strided_slice %84 {offsets = [0, 18], sizes = [4, 256], strides = [1, 1]} : vector<4x290xf32> to vector<4x256xf32>
    %97 = vector.broadcast %24 : vector<1x256xf32> to vector<4x256xf32>
    %98 = arith.mulf %96, %97 : vector<4x256xf32>
    %99 = vector.extract_strided_slice %84 {offsets = [0, 32], sizes = [4, 256], strides = [1, 1]} : vector<4x290xf32> to vector<4x256xf32>
    %100 = vector.broadcast %20 : vector<1x256xf32> to vector<4x256xf32>
    %101 = arith.mulf %99, %100 : vector<4x256xf32>
    %102 = vector.extract_strided_slice %84 {offsets = [0, 33], sizes = [4, 256], strides = [1, 1]} : vector<4x290xf32> to vector<4x256xf32>
    %103 = vector.extract_strided_slice %84 {offsets = [0, 34], sizes = [4, 256], strides = [1, 1]} : vector<4x290xf32> to vector<4x256xf32>
    %104 = vector.broadcast %24 : vector<1x256xf32> to vector<4x256xf32>
    %105 = arith.mulf %103, %104 : vector<4x256xf32>
    %106 = tpu.concatenate %87, %88, %91, %94, %95, %98, %101, %102, %105 in 0 : vector<4x256xf32>, vector<4x256xf32>, vector<4x256xf32>, vector<4x256xf32>, vector<4x256xf32>, vector<4x256xf32>, vector<4x256xf32>, vector<4x256xf32>, vector<4x256xf32> -> vector<36x256xf32>
    %c0_33 = arith.constant 0 : index
    %c0_34 = arith.constant 0 : index
    %107 = vector.load %arg9[%c0_33, %c0_34] : memref<4x36xf32, #tpu.memory_space<vmem>>, vector<4x36xf32>
    %cst_35 = arith.constant dense<0.000000e+00> : vector<4x256xf32>
    %108 = tpu.matmul %107, %106, %cst_35 {dimension_numbers = #tpu.dot_dimension_numbers<[1], [0], [0], [1], [0, 0, 1, 1], [], []>} : vector<4x36xf32>, vector<36x256xf32>, vector<4x256xf32> -> vector<4x256xf32>
    %c0_36 = arith.constant 0 : index
    %c0_37 = arith.constant 0 : index
    %109 = vector.load %arg10[%c0_36, %c0_37] : memref<4x1xf32, #tpu.memory_space<vmem>>, vector<4x1xf32>
    %110 = vector.broadcast %109 : vector<4x1xf32> to vector<4x256xf32>
    %111 = arith.addf %108, %110 : vector<4x256xf32>
    %cst_38 = arith.constant 0.000000e+00 : f32
    %112 = vector.broadcast %cst_38 : f32 to vector<4x256xf32>
    %113 = arith.cmpf ogt, %111, %112 : vector<4x256xf32>
    %cst_39 = arith.constant 2.000000e-01 : f32
    %114 = vector.broadcast %cst_39 : f32 to vector<4x256xf32>
    %115 = arith.mulf %114, %111 : vector<4x256xf32>
    %116 = arith.select %113, %111, %115 : vector<4x256xi1>, vector<4x256xf32>
    %c0_40 = arith.constant 0 : index
    %c0_41 = arith.constant 0 : index
    %c0_42 = arith.constant 0 : index
    %117 = vector.load %arg11[%c0_40, %c0_41, %c0_42] : memref<1x4x256xf32, #tpu.memory_space<vmem>>, vector<1x4x256xf32>
    %118 = vector.shape_cast %117 : vector<1x4x256xf32> to vector<4x256xf32>
    %119 = vector.shape_cast %116 : vector<4x256xf32> to vector<1x4x256xf32>
    tpu.vector_store %arg11[%c0_40, %c0_41, %c0_42], %119 {strides = array<i32>} : memref<1x4x256xf32, #tpu.memory_space<vmem>>, vector<1x4x256xf32>,
    return
  }
  func.func @transform_0(%arg0: i32) -> (i32, i32, i32) {
    %c0_i32 = arith.constant 0 : i32
    %c0_i32_0 = arith.constant 0 : i32
    %c0_i32_1 = arith.constant 0 : i32
    return %arg0, %c0_i32, %c0_i32_0 : i32, i32, i32
  }
  func.func @transform_1(%arg0: i32) -> (i32, i32, i32) {
    %c0_i32 = arith.constant 0 : i32
    %c0_i32_0 = arith.constant 0 : i32
    %c0_i32_1 = arith.constant 0 : i32
    return %arg0, %c0_i32, %c0_i32_0 : i32, i32, i32
  }
  func.func @transform_2(%arg0: i32) -> (i32, i32) {
    %c0_i32 = arith.constant 0 : i32
    %c0_i32_0 = arith.constant 0 : i32
    %c0_i32_1 = arith.constant 0 : i32
    return %c0_i32, %c0_i32_0 : i32, i32
  }
  func.func @transform_3(%arg0: i32) -> (i32, i32) {
    %c0_i32 = arith.constant 0 : i32
    %c0_i32_0 = arith.constant 0 : i32
    %c0_i32_1 = arith.constant 0 : i32
    return %c0_i32, %c0_i32_0 : i32, i32
  }
  func.func @transform_4(%arg0: i32) -> (i32, i32) {
    %c0_i32 = arith.constant 0 : i32
    %c0_i32_0 = arith.constant 0 : i32
    %c0_i32_1 = arith.constant 0 : i32
    return %c0_i32, %c0_i32_0 : i32, i32
  }
  func.func @transform_5(%arg0: i32) -> (i32, i32) {
    %c0_i32 = arith.constant 0 : i32
    %c0_i32_0 = arith.constant 0 : i32
    %c0_i32_1 = arith.constant 0 : i32
    return %c0_i32, %c0_i32_0 : i32, i32
  }
  func.func @transform_6(%arg0: i32) -> (i32, i32) {
    %c0_i32 = arith.constant 0 : i32
    %c0_i32_0 = arith.constant 0 : i32
    %c0_i32_1 = arith.constant 0 : i32
    return %c0_i32, %c0_i32_0 : i32, i32
  }
  func.func @transform_7(%arg0: i32) -> (i32, i32) {
    %c0_i32 = arith.constant 0 : i32
    %c0_i32_0 = arith.constant 0 : i32
    %c0_i32_1 = arith.constant 0 : i32
    return %c0_i32, %c0_i32_0 : i32, i32
  }
  func.func @transform_8(%arg0: i32) -> (i32, i32) {
    %c0_i32 = arith.constant 0 : i32
    %c0_i32_0 = arith.constant 0 : i32
    %c0_i32_1 = arith.constant 0 : i32
    return %c0_i32, %c0_i32_0 : i32, i32
  }
  func.func @transform_9(%arg0: i32) -> (i32, i32) {
    %c0_i32 = arith.constant 0 : i32
    %c0_i32_0 = arith.constant 0 : i32
    %c0_i32_1 = arith.constant 0 : i32
    return %c0_i32, %c0_i32_0 : i32, i32
  }
  func.func @transform_10(%arg0: i32) -> (i32, i32, i32) {
    %c0_i32 = arith.constant 0 : i32
    %c0_i32_0 = arith.constant 0 : i32
    %c0_i32_1 = arith.constant 0 : i32
    return %arg0, %c0_i32, %c0_i32_0 : i32, i32, i32
  }
}

</mosaic_0001>

<bundles_post_ra>
// kernel: unet_up_block.1
= control target key start
LH: loop header
LB: loop body
LE: loop exit
PB: predicated region body
PF: predicated region fallthrough
CT: control target
= control target key end

     0   :  { %15 = vsyncpa [#allocation3], 0  ;;  %s2601_s0 = inlined_call_operand.vmem [shape: f32[2,8,64], index: 0, kind: input, shape index: {}]   ;;  %s2602_s1 = inlined_call_operand.vmem [shape: f32[2,4,256], index: 1, kind: input, shape index: {}]   ;;  %s2603_s2 = inlined_call_operand.vmem [shape: f32[16,8], index: 2, kind: input, shape index: {}]   ;;  %s2604_s3 = inlined_call_operand.vmem [shape: f32[4,1], index: 3, kind: input, shape index: {}]   ;;  %s2605_s4 = inlined_call_operand.hbm [shape: f32[256,256], index: 4, kind: input, shape index: {}]   ;;  %s2606_s5 = inlined_call_operand.hbm [shape: f32[256,290], index: 5, kind: input, shape index: {}]   ;;  %s2607_s6 = inlined_call_operand.vmem [shape: f32[4,72], index: 6, kind: input, shape index: {}]   ;;  %s2608_s7 = inlined_call_operand.vmem [shape: f32[4,1], index: 7, kind: input, shape index: {}]   ;;  %s2609_s8 = inlined_call_operand.vmem [shape: f32[4,36], index: 8, kind: input, shape index: {}]   ;;  %s2610_s9 = inlined_call_operand.vmem [shape: f32[4,1], index: 9, kind: input, shape index: {}]   ;;  %s2611_s10 = inlined_call_operand.vmem [shape: f32[2,4,256], index: 10, kind: output, shape index: {}]  }
   0x1   :  { %16 = vsyncpa [#allocation5], 0  ;;  %s1934_s13 = smov 0  }
   0x2 LB: > { %s290_s16 = sshll.u32 %s2605_s4, 4  ;;  %s1594_s17 = sadd.s32 4294967295, %s1856_s13   ;;  %s1856_s13 = sphi %s1934_s13, %s22_s13   ;;  %s291_s16 = int_to_ptr.hbm [resolvable:$true] %s290_s16 }
   0x3   : > { %p1596_p0 = scmp.ge.s32.totalorder %s1856_s13, 1  ;;  %p273_p1 = scmp.lt.s32.totalorder %s1856_s13, 3 }
   0x4   : > { %p1647_p2 = scmp.eq.s32.totalorder %s1594_s17, 0  ;;  %s1858_s19 = smov [#allocation2]  }
   0x5   : > { %p1945_p3 = pnand %p1596_p0, %p273_p1  ;;  %s292_s20 = sshll.u32 %s1858_s19, 4  ;;  %s293_s20 = int_to_ptr.vmem [resolvable:$true] %s292_s20 }
   0x6   : > { %s304_s23 = sshll.u32 %s2606_s5, 4  ;;  %s1859_s24 = smov [#allocation4]   ;;  %s305_s23 = int_to_ptr.hbm [resolvable:$true] %s304_s23 }
   0x7   : > { %p1640_p4 = pneg %p1945_p3  ;;  %s306_s25 = sshll.u32 %s1859_s24, 4  ;;  %s307_s25 = int_to_ptr.vmem [resolvable:$true] %s306_s25 }
   0x8   : > { %s1860_s26 = smov 256   ;;  %s1861_s27 = smov 16  }
   0x9   : > { %p1641_p5 = pnand %p1647_p2, %p1640_p4  ;;  %s1862_s28 = smov 384  }
   0xa   : > { %s1863_s29 = smov 24   ;;  %349 = sbr.rel (%p1945_p3) target bundleno = 1153 (0x481), region = 60 }
   0xb   : > { %1643 = dma.hbm_to_vmem [thread:$0]  (!%p1641_p5), %s291_s16, 8192, %s293_s20, [#allocation3], %s1860_s26, %s1860_s26, %s1861_s27  }
   0xc   : > { %1646 = dma.hbm_to_vmem [thread:$0]  (!%p1641_p5), %s305_s23, 12288, %s307_s25, [#allocation5], %s1862_s28, %s1862_s28, %s1863_s29  }
   0xf   : > { %1847 = dma.done.wait (%p1647_p2), [#allocation3], 8192  }
  0x10   : > { %1849 = vsyncadd (%p1647_p2), [#allocation3], 4294959104 }
  0x11   : > { %1851 = dma.done.wait (%p1647_p2), [#allocation5], 12288  }
  0x12   : > { %1853 = vsyncadd (%p1647_p2), [#allocation5], 4294955008  ;;  %p397_p6 = scmp.lt.s32.totalorder %s1594_s17, 1  ;;  %vm549_vm0 = vcmask 64512   ;;  %v546_v2 = vld [vmem:[%s2603_s2] sm:$0xff]  ;;  %v609_v3 = vld [vmem:[#allocation2 + $0xf0] sm:$0xff] }
  0x13   : > { %v610_v4 = vld [vmem:[#allocation2 + $0xf8] sm:$0xff]  ;;  %v593_v5 = vld [vmem:[#allocation2 + $0x70] sm:$0xff]  ;;  %v607_v6 = vld [vmem:[#allocation2 + $0xe0] sm:$0xff]  ;;  %vm613_vm1 = vcmask 523264   ;;  %s1866_s24 = smov 32   ;;  %s1867_s25 = smov 16  }
  0x14   : > { %s2779_s17 = smov (!%p397_p6, %s1594_s17), 1  ;;  %644 = vmatpush.msra.mxu2 %v610_v4  ;;  %v608_v7 = vld [vmem:[#allocation2 + $0xe8] sm:$0xff]  ;;  %666 = vmatpush.msra.mxu3 %v593_v5  ;;  %v591_v8 = vld [vmem:[#allocation2 + $0x60] sm:$0xff]  ;;  %v594_v9 = vld [vmem:[#allocation2 + $0x78] sm:$0xff]  ;;  %v1864_v5 = vmov 0   ;;  %s1868_s26 = smov 34  }
  0x15   : > { %s1961_s30 = sshll.u32 %s2779_s17, 3  ;;  %v605_v10 = vld [vmem:[#allocation2 + $0xd0] sm:$0xff]  ;;  %686 = vmatpush.msra.mxu0 %v594_v9  ;;  %v606_v11 = vld [vmem:[#allocation2 + $0xd8] sm:$0xff]  ;;  %v592_v13 = vld [vmem:[#allocation2 + $0x68] sm:$0xff]  ;;  %1680 = vset.pattern.permute.xlu0 %v1864_v5  ;;  %s1869_s27 = smov 18   ;;  %vm836_vm6 = vcmask 1043456  }
  0x16   : > { %s400_s14 = scalar_lea.vmem %s2601_s0, %s1961_s30  ;;  %s405_s18 = scalar_lea.vmem %s2602_s1, %s1961_s30  ;;  %645 = vmatpush.msra.mxu2 %v608_v7  ;;  %v589_v12 = vld [vmem:[#allocation2 + $0x50] sm:$0xff]  ;;  %667 = vmatpush.msra.mxu3 %v591_v8  ;;  %v604_v14 = vld [vmem:[#allocation2 + $0xc8] sm:$0xff]  ;;  %v603_v15 = vld [vmem:[#allocation2 + $0xc0] sm:$0xff]  ;;  %vm1017_vm7 = vcmask 277504   ;;  %vm1005_vm8 = vcmask 261120   ;;  %vm993_vm9 = vcmask 146432  }
  0x17   : > { %v548_v0 = vld [vmem:[%s400_s14] sm:$0xff]  ;;  %687 = vmatpush.msra.mxu0 %v592_v13  ;;  %v587_v16 = vld [vmem:[#allocation2 + $0x40] sm:$0xff]  ;;  %v601_v20 = vld [vmem:[#allocation2 + $0xb0] sm:$0xff]  ;;  %1746 = vset.pattern.permute.xlu1 %v1864_v5  ;;  %s1870_s28 = smov 2   ;;  %s1871_s29 = smov 127   ;;  %vm981_vm10 = vcmask 130048  }
  0x18   : > { %v828_v1 = vld [vmem:[%s405_s18] sm:$0xff]  ;;  %571 = vmatpush.msra.mxu1 %v548_v0  ;;  %646 = vmatpush.msra.mxu2 %v606_v11  ;;  %v547_v18 = vld [vmem:[%s2603_s2 + $0x8] sm:$0xff]  ;;  %v585_v21 = vld [vmem:[#allocation2 + $0x30] sm:$0xff]  ;;  %s1872_s11 = smov 95   ;;  %s1873_s12 = smov 94   ;;  %vm967_vm11 = vcmask 15360  }
  0x19   : > { %831 = vst [vmem:[#allocation1 + $0x1] ss:$2 sm:$0xff] %v828_v1  ;;  %1612 = vmatmul.msk.f32.vlgmr.msra.gmra.mxu1 %vm549_vm0, %v546_v2  ;;  %v590_v17 = vld [vmem:[#allocation2 + $0x58] sm:$0xff]  ;;  %668 = vmatpush.msra.mxu3 %v589_v12  ;;  %v588_v22 = vld [vmem:[#allocation2 + $0x48] sm:$0xff]  ;;  %v599_v24 = vld [vmem:[#allocation2 + $0xa0] sm:$0xff]  ;;  %s1874_s14 = smov 111  }
  0x1a   : > { %624 = vmatpush.msrb.mxu1 %v609_v3  ;;  %v602_v19 = vld [vmem:[#allocation2 + $0xb8] sm:$0xff]  ;;  %647 = vmatpush.msra.mxu2 %v604_v14  ;;  %v600_v23 = vld [vmem:[#allocation2 + $0xa8] sm:$0xff]  ;;  %v583_v25 = vld [vmem:[#allocation2 + $0x20] sm:$0xff]  ;;  %s1875_s15 = smov 96   ;;  %s1876_s16 = smov 110   ;;  %vm1126_vm12 = vcmask 769024  }
  0x1b   : > { %688 = vmatpush.msra.mxu0 %v590_v17  ;;  %669 = vmatpush.msra.mxu3 %v587_v16  ;;  %v586_v26 = vld [vmem:[#allocation2 + $0x38] sm:$0xff]  ;;  %v597_v28 = vld [vmem:[#allocation2 + $0x90] sm:$0xff]  ;;  %v584_v30 = vld [vmem:[#allocation2 + $0x28] sm:$0xff]  ;;  %s1877_s18 = smov 112   ;;  %s1878_s19 = smov 126   ;;  %vm1112_vm13 = vcmask 777216  }
  0x1c   : > { %625 = vmatpush.msrb.mxu1 %v607_v6  ;;  %648 = vmatpush.msra.mxu2 %v602_v19  ;;  %v598_v27 = vld [vmem:[#allocation2 + $0x98] sm:$0xff]  ;;  %v581_v29 = vld [vmem:[#allocation2 + $0x10] sm:$0xff]  ;;  %v596_v31 = vld [vmem:[#allocation2 + $0x88] sm:$0xff]  ;;  %vm1101_vm14 = vcmask 785408   ;;  %vm1087_vm15 = vcmask 900096  }
  0x1d   : > { %670 = vmatpush.msra.mxu3 %v585_v21  ;;  %689 = vmatpush.msra.mxu0 %v588_v22  ;;  %v595_v32 = vld [vmem:[#allocation2 + $0x80] sm:$0xff]  ;;  %v582_v34 = vld [vmem:[#allocation2 + $0x18] sm:$0xff]  ;;  %v712_v35 = vld [vmem:[#allocation2 + $0x170] sm:$0xff] }
  0x1e   : > { %626 = vmatpush.msrb.mxu1 %v605_v10  ;;  %649 = vmatpush.msra.mxu2 %v600_v23  ;;  %v579_v33 = vld [vmem:[#allocation2] sm:$0xff]  ;;  %v713_v36 = vld [vmem:[#allocation2 + $0x178] sm:$0xff]  ;;  %v773_v37 = vld [vmem:[#allocation2 + $0x1f0] sm:$0xff] }
  0x1f   : > { %671 = vmatpush.msra.mxu3 %v583_v25  ;;  %690 = vmatpush.msra.mxu0 %v586_v26  ;;  %v580_v38 = vld [vmem:[#allocation2 + $0x8] sm:$0xff]  ;;  %v710_v39 = vld [vmem:[#allocation2 + $0x160] sm:$0xff]  ;;  %v774_v42 = vld [vmem:[#allocation2 + $0x1f8] sm:$0xff] }
  0x20   : > { %627 = vmatpush.msrb.mxu1 %v603_v15  ;;  %650 = vmatpush.msra.mxu2 %v598_v27  ;;  %v711_v40 = vld [vmem:[#allocation2 + $0x168] sm:$0xff]  ;;  %v771_v41 = vld [vmem:[#allocation2 + $0x1e0] sm:$0xff]  ;;  %v708_v43 = vld [vmem:[#allocation2 + $0x150] sm:$0xff] }
  0x21   : > { %1613 = vmatmul.msk.f32.gmra.mxu1 %vm549_vm0, %v547_v18  ;;  %672 = vmatpush.msra.mxu3 %v581_v29  ;;  %v709_v44 = vld [vmem:[#allocation2 + $0x158] sm:$0xff]  ;;  %v769_v45 = vld [vmem:[#allocation2 + $0x1d0] sm:$0xff]  ;;  %v772_v46 = vld [vmem:[#allocation2 + $0x1e8] sm:$0xff]  ;;  %vm1073_vm0 = vcmask 908288  }
  0x22   : > { %628 = vmatpush.msrb.mxu1 %v601_v20  ;;  %691 = vmatpush.msra.mxu0 %v584_v30  ;;  %v706_v47 = vld [vmem:[#allocation2 + $0x140] sm:$0xff]  ;;  %v707_v48 = vld [vmem:[#allocation2 + $0x148] sm:$0xff]  ;;  %v770_v50 = vld [vmem:[#allocation2 + $0x1d8] sm:$0xff] }
  0x23   : > { %651 = vmatpush.msra.mxu2 %v596_v31  ;;  %673 = vmatpush.msra.mxu3 %v579_v33  ;;  %v767_v49 = vld [vmem:[#allocation2 + $0x1c0] sm:$0xff]  ;;  %v704_v51 = vld [vmem:[#allocation2 + $0x130] sm:$0xff]  ;;  %v705_v52 = vld [vmem:[#allocation2 + $0x138] sm:$0xff] }
  0x24   : > { %629 = vmatpush.msrb.mxu1 %v599_v24  ;;  %692 = vmatpush.msra.mxu0 %v582_v34  ;;  %v765_v53 = vld [vmem:[#allocation2 + $0x1b0] sm:$0xff]  ;;  %v768_v54 = vld [vmem:[#allocation2 + $0x1c8] sm:$0xff]  ;;  %v702_v55 = vld [vmem:[#allocation2 + $0x120] sm:$0xff] }
  0x25   : > { %745 = vmatpush.msrb.mxu2 %v713_v36  ;;  %786 = vmatpush.msrb.mxu3 %v773_v37  ;;  %v703_v56 = vld [vmem:[#allocation2 + $0x128] sm:$0xff]  ;;  %v763_v57 = vld [vmem:[#allocation2 + $0x1a0] sm:$0xff]  ;;  %v766_v58 = vld [vmem:[#allocation2 + $0x1b8] sm:$0xff] }
  0x26   : > { %630 = vmatpush.msrb.mxu1 %v597_v28  ;;  %693 = vmatpush.msra.mxu0 %v580_v38  ;;  %v700_v59 = vld [vmem:[#allocation2 + $0x110] sm:$0xff]  ;;  %v701_v60 = vld [vmem:[#allocation2 + $0x118] sm:$0xff]  ;;  %v764_v62 = vld [vmem:[#allocation2 + $0x1a8] sm:$0xff] }
  0x27   : > { %746 = vmatpush.msrb.mxu2 %v711_v40  ;;  %787 = vmatpush.msrb.mxu3 %v771_v41  ;;  %v761_v61 = vld [vmem:[#allocation2 + $0x190] sm:$0xff]  ;;  %v698_v63 = vld [vmem:[#allocation2 + $0x100] sm:$0xff]  ;;  %v699_v0 = vld [vmem:[#allocation2 + $0x108] sm:$0xff] }
  0x28   : > { %631 = vmatpush.msrb.mxu1 %v595_v32  ;;  %806 = vmatpush.msrb.mxu0 %v774_v42  ;;  %v759_v1 = vld [vmem:[#allocation2 + $0x180] sm:$0xff]  ;;  %v762_v2 = vld [vmem:[#allocation2 + $0x198] sm:$0xff]  ;;  %v760_v3 = vld [vmem:[#allocation2 + $0x188] sm:$0xff] }
  0x29   : > { %747 = vmatpush.msrb.mxu2 %v709_v44  ;;  %788 = vmatpush.msrb.mxu3 %v769_v45  ;;  %v820_v4 = vld [vmem:[%s2604_s3] sm:$0xf]  ;;  %v1982_v6 = vld [vmem:[#allocation4 + $0x170] sm:$0xff]  ;;  %v1988_v10 = vld [vmem:[#allocation4 + $0x168] sm:$0xff] }
  0x2a   : > { %725 = vmatpush.msra.mxu1 %v712_v35  ;;  %807 = vmatpush.msrb.mxu0 %v772_v46  ;;  %v1984_v7 = vld [vmem:[#allocation4 + $0x2f0] sm:$0xff]  ;;  %v1990_v11 = vld [vmem:[#allocation4 + $0x2e8] sm:$0xff]  ;;  %v1993_v12 = vld [vmem:[#allocation4 + $0x158] sm:$0xff] }
  0x2b   : > { %748 = vmatpush.msrb.mxu2 %v707_v48  ;;  %789 = vmatpush.msrb.mxu3 %v767_v49  ;;  %2668 = vst [vmem:[#allocation8_spill] sm:$0xff] %v1990_v11  ;;  %v1996_v13 = vld [vmem:[#allocation4 + $0x2d8] sm:$0xff]  ;;  %v2000_v14 = vld [vmem:[#allocation4 + $0x150] sm:$0xff]  ;;  %v2006_v16 = vld [vmem:[#allocation4 + $0x140] sm:$0xff] }
  0x2c   : > { %726 = vmatpush.msra.mxu1 %v710_v39  ;;  %808 = vmatpush.msrb.mxu0 %v770_v50  ;;  %v2002_v15 = vld [vmem:[#allocation4 + $0x2d0] sm:$0xff]  ;;  %v2008_v17 = vld [vmem:[#allocation4 + $0x2c0] sm:$0xff]  ;;  %v2010_v18 = vld [vmem:[#allocation4 + $0x138] sm:$0xff] }
  0x2d   : > { %749 = vmatpush.msrb.mxu2 %v705_v52  ;;  %790 = vmatpush.msrb.mxu3 %v765_v53  ;;  %2669 = vst [vmem:[#allocation9_spill] sm:$0xff] %v2002_v15  ;;  %v2012_v19 = vld [vmem:[#allocation4 + $0x2b8] sm:$0xff]  ;;  %v2018_v20 = vld [vmem:[#allocation4 + $0x128] sm:$0xff]  ;;  %v2022_v22 = vld [vmem:[#allocation4 + $0x120] sm:$0xff] }
  0x2e   : > { %727 = vmatpush.msra.mxu1 %v708_v43  ;;  %809 = vmatpush.msrb.mxu0 %v768_v54  ;;  %2670 = vst [vmem:[#allocation10_spill] sm:$0xff] %v2012_v19  ;;  %v2020_v21 = vld [vmem:[#allocation4 + $0x2a8] sm:$0xff]  ;;  %v2024_v23 = vld [vmem:[#allocation4 + $0x2a0] sm:$0xff]  ;;  %v2040_v28 = vld [vmem:[#allocation4 + $0x110] sm:$0xff] }
  0x2f   : > { %750 = vmatpush.msrb.mxu2 %v703_v56  ;;  %791 = vmatpush.msrb.mxu3 %v763_v57  ;;  %2671 = vst [vmem:[#allocation11_spill] sm:$0xff] %v2024_v23  ;;  %v2033_v26 = vld [vmem:[#allocation4 + $0x108] sm:$0xff]  ;;  %v2044_v29 = vld [vmem:[#allocation4 + $0xf0] sm:$0xff]  ;;  %v2050_v31 = vld [vmem:[#allocation4 + $0xd8] sm:$0xff] }
  0x30   : > { %728 = vmatpush.msra.mxu1 %v706_v47  ;;  %810 = vmatpush.msrb.mxu0 %v766_v58  ;;  %v2036_v27 = vld [vmem:[#allocation4 + $0x288] sm:$0xff]  ;;  %v2046_v30 = vld [vmem:[#allocation4 + $0x270] sm:$0xff]  ;;  %v2052_v32 = vld [vmem:[#allocation4 + $0x258] sm:$0xff] }
  0x31   : > { %751 = vmatpush.msrb.mxu2 %v701_v60  ;;  %792 = vmatpush.msrb.mxu3 %v761_v61  ;;  %2672 = vst [vmem:[#allocation12_spill] sm:$0xff] %v2036_v27  ;;  %v2057_v33 = vld [vmem:[#allocation4 + $0xc0] sm:$0xff]  ;;  %v2063_v35 = vld [vmem:[#allocation4 + $0xa8] sm:$0xff]  ;;  %v2069_v37 = vld [vmem:[#allocation4 + $0x90] sm:$0xff] }
  0x32   : > { %729 = vmatpush.msra.mxu1 %v704_v51  ;;  %811 = vmatpush.msrb.mxu0 %v764_v62  ;;  %2673 = vst [vmem:[#allocation13_spill] sm:$0xff] %v2046_v30  ;;  %v2059_v34 = vld [vmem:[#allocation4 + $0x240] sm:$0xff]  ;;  %v2065_v36 = vld [vmem:[#allocation4 + $0x228] sm:$0xff]  ;;  %v2071_v38 = vld [vmem:[#allocation4 + $0x210] sm:$0xff] }
  0x33   : > { %752 = vmatpush.msrb.mxu2 %v699_v0  ;;  %793 = vmatpush.msrb.mxu3 %v759_v1  ;;  %2674 = vst [vmem:[#allocation14_spill] sm:$0xff] %v2052_v32  ;;  %v2075_v39 = vld [vmem:[#allocation4 + $0x78] sm:$0xff]  ;;  %v2081_v41 = vld [vmem:[#allocation4 + $0x60] sm:$0xff]  ;;  %v2087_v43 = vld [vmem:[#allocation4 + $0x48] sm:$0xff] }
  0x34   : > { %730 = vmatpush.msra.mxu1 %v702_v55  ;;  %812 = vmatpush.msrb.mxu0 %v762_v2  ;;  %2675 = vst [vmem:[#allocation15_spill] sm:$0xff] %v2059_v34  ;;  %v2077_v40 = vld [vmem:[#allocation4 + $0x1f8] sm:$0xff]  ;;  %v2083_v42 = vld [vmem:[#allocation4 + $0x1e0] sm:$0xff]  ;;  %v2089_v44 = vld [vmem:[#allocation4 + $0x1c8] sm:$0xff] }
  0x35   : > { %823 = vperm.xlu0 %1680, %v820_v4   ;;  %2676 = vst [vmem:[#allocation16_spill] sm:$0xff] %v2065_v36  ;;  %v2093_v45 = vld [vmem:[#allocation4 + $0x30] sm:$0xff]  ;;  %v2099_v47 = vld [vmem:[#allocation4 + $0x18] sm:$0xff]  ;;  %v2105_v49 = vld [vmem:[#allocation4] sm:$0xff] }
  0x36   : > { %731 = vmatpush.msra.mxu1 %v700_v59  ;;  %813 = vmatpush.msrb.mxu0 %v760_v3  ;;  %2677 = vst [vmem:[#allocation17_spill] sm:$0xff] %v2069_v37  ;;  %v2095_v46 = vld [vmem:[#allocation4 + $0x1b0] sm:$0xff]  ;;  %v2101_v48 = vld [vmem:[#allocation4 + $0x198] sm:$0xff]  ;;  %v2113_v51 = vld [vmem:[#allocation4 + $0x180] sm:$0xff] }
  0x37   : > { %2678 = vst [vmem:[#allocation18_spill] sm:$0xff] %v2071_v38  ;;  %v2109_v50 = vld [vmem:[#allocation4 + $0x178] sm:$0xff]  ;;  %v2117_v53 = vld [vmem:[#allocation4 + $0x290] sm:$0xff]  ;;  %v2121_v54 = vld [vmem:[#allocation4 + $0x160] sm:$0xff] }
  0x38   : > { %732 = vmatpush.msra.mxu1 %v698_v63  ;;  %2679 = vst [vmem:[#allocation19_spill] sm:$0xff] %v2075_v39  ;;  %v2115_v52 = vld [vmem:[#allocation4 + $0xf8] sm:$0xff]  ;;  %v2127_v56 = vld [vmem:[#allocation4 + $0xe0] sm:$0xff]  ;;  %v2131_v58 = vld [vmem:[#allocation4 + $0x148] sm:$0xff] }
  0x39   : > { %2680 = vst [vmem:[#allocation20_spill] sm:$0xff] %v2077_v40  ;;  %v2123_v55 = vld [vmem:[#allocation4 + $0x2f8] sm:$0xff]  ;;  %v2135_v59 = vld [vmem:[#allocation4 + $0x2e0] sm:$0xff]  ;;  %v2137_v60 = vld [vmem:[#allocation4 + $0xc8] sm:$0xff] }
  0x3a   : > { %2681 = vst [vmem:[#allocation21_spill] sm:$0xff] %v2081_v41  ;;  %v2129_v57 = vld [vmem:[#allocation4 + $0x278] sm:$0xff]  ;;  %v2139_v61 = vld [vmem:[#allocation4 + $0x260] sm:$0xff]  ;;  %v2143_v62 = vld [vmem:[#allocation4 + $0x130] sm:$0xff] }
  0x3b   : > { %2682 = vst [vmem:[#allocation22_spill] sm:$0xff] %v2083_v42  ;;  %v2145_v63 = vld [vmem:[#allocation4 + $0x2c8] sm:$0xff]  ;;  %v2152_v0 = vld [vmem:[#allocation4 + $0xb0] sm:$0xff]  ;;  %v2156_v2 = vld [vmem:[#allocation4 + $0x118] sm:$0xff] }
  0x3c   : > { %2683 = vst [vmem:[#allocation23_spill] sm:$0xff] %v2087_v43  ;;  %v2154_v1 = vld [vmem:[#allocation4 + $0x248] sm:$0xff]  ;;  %v2160_v3 = vld [vmem:[#allocation4 + $0x2b0] sm:$0xff]  ;;  %v2164_v4 = vld [vmem:[#allocation4 + $0x98] sm:$0xff] }
  0x3d   : > { %2684 = vst [vmem:[#allocation24_spill] sm:$0xff] %v2089_v44  ;;  %v2166_v5 = vld [vmem:[#allocation4 + $0x230] sm:$0xff] }
  0x3e   : > { %2685 = vst [vmem:[#allocation25_spill] sm:$0xff] %v2093_v45 }
  0x3f   : > { %2686 = vst [vmem:[#allocation26_spill] sm:$0xff] %v2095_v46 }
  0x40   : > { %2687 = vst [vmem:[#allocation27_spill] sm:$0xff] %v2099_v47 }
  0x41   : > { %2688 = vst [vmem:[#allocation28_spill] sm:$0xff] %v2101_v48 }
  0x42   : > { %2689 = vst [vmem:[#allocation29_spill] sm:$0xff] %v2105_v49 }
  0x43   : > { %2690 = vst [vmem:[#allocation30_spill] sm:$0xff] %v2109_v50 }
  0x44   : > { %2691 = vst [vmem:[#allocation31_spill] sm:$0xff] %v2113_v51 }
  0x45   : > { %2692 = vst [vmem:[#allocation32_spill] sm:$0xff] %v2121_v54 }
  0x46   : > { %2693 = vst [vmem:[#allocation33_spill] sm:$0xff] %v2123_v55 }
  0x47   : > { %2694 = vst [vmem:[#allocation34_spill] sm:$0xff] %v2131_v58 }
  0x48   : > { %2695 = vst [vmem:[#allocation35_spill] sm:$0xff] %v2135_v59 }
  0x49   : > { %2696 = vst [vmem:[#allocation36_spill] sm:$0xff] %v2143_v62 }
  0x4a   : > { %2697 = vst [vmem:[#allocation37_spill] sm:$0xff] %v2145_v63 }
  0x4b   : > { %2698 = vst [vmem:[#allocation38_spill] sm:$0xff] %v2156_v2 }
  0x4c   : > { %2699 = vst [vmem:[#allocation39_spill] sm:$0xff] %v2160_v3 }
  0x96   : > { %v573_v8 = vpop.f32.mrf.mxu1 }
  0x97   : > { %v612_v9 = vrot.slane %v573_v8, 4  ;;  %1616 = vmatmul.msk.f32.vlgmr.msra.gmra.mxu3 %vm613_vm1, %v573_v8  ;;  %1617 = vmatmul.msk.f32.vlgmr.msra.gmra.mxu0 %vm613_vm1, %v573_v8  ;;  %v2168_v8 = vld [vmem:[#allocation4 + $0x100] sm:$0xff] }
  0x98   : > { %879 = vmatpush.msra.mxu3 %v1982_v6  ;;  %899 = vmatpush.msra.mxu0 %v1984_v7  ;;  %2700 = vst [vmem:[#allocation40_spill] sm:$0xff] %v2168_v8 }
  0x99   : > { %1614 = vmatmul.msk.f32.vlgmr.msrb.gmra.mxu1 %vm613_vm1, %v612_v9  ;;  %1615 = vmatmul.msk.f32.vlgmr.msra.gmra.mxu2 %vm613_vm1, %v612_v9  ;;  %v2172_v9 = vld [vmem:[#allocation4 + $0x298] sm:$0xff] }
  0x9a   : > { %839 = vmatpush.msrb.mxu1 %v1988_v10  ;;  %859 = vmatpush.msra.mxu2 %v1990_v11  ;;  %2701 = vst [vmem:[#allocation41_spill] sm:$0xff] %v2172_v9 }
  0x9b   : > { %880 = vmatpush.msra.mxu3 %v1993_v12  ;;  %900 = vmatpush.msra.mxu0 %v1996_v13 }
  0x9c   : > { %840 = vmatpush.msrb.mxu1 %v2000_v14  ;;  %860 = vmatpush.msra.mxu2 %v2002_v15 }
  0x9d   : > { %881 = vmatpush.msra.mxu3 %v2006_v16  ;;  %901 = vmatpush.msra.mxu0 %v2008_v17 }
  0x9e   : > { %v576_v24 = vpop.f32.mrf.mxu1  ;;  %841 = vmatpush.msrb.mxu1 %v2010_v18  ;;  %861 = vmatpush.msra.mxu2 %v2012_v19 }
  0x9f   : > { %v775_v25 = vrot.slane %v576_v24, 4  ;;  %882 = vmatpush.msra.mxu3 %v2018_v20  ;;  %902 = vmatpush.msra.mxu0 %v2020_v21 }
  0xa0   : > { %842 = vmatpush.msrb.mxu1 %v2022_v22  ;;  %862 = vmatpush.msra.mxu2 %v2024_v23 }
  0xa1   : > { %1618 = vmatmul.msk.f32.vlgmr.msra.gmra.mxu1 %vm613_vm1, %v576_v24  ;;  %1619 = vmatmul.msk.f32.vlgmr.msrb.gmra.mxu2 %vm613_vm1, %v576_v24  ;;  %v2176_v24 = vld [vmem:[#allocation4 + $0x80] sm:$0xff] }
  0xa2   : > { %1620 = vmatmul.msk.f32.vlgmr.msrb.gmra.mxu3 %vm613_vm1, %v775_v25  ;;  %1621 = vmatmul.msk.f32.vlgmr.msrb.gmra.mxu0 %vm613_vm1, %v775_v25  ;;  %v2178_v25 = vld [vmem:[#allocation4 + $0x218] sm:$0xff]  ;;  %vm1062_vm1 = vcmask 916480  }
  0xa3   : > { %843 = vmatpush.msrb.mxu1 %v2033_v26  ;;  %863 = vmatpush.msra.mxu2 %v2036_v27 }
  0xa4   : > { %883 = vmatpush.msra.mxu3 %v2040_v28  ;;  %903 = vmatpush.msra.mxu0 %v2117_v53 }
  0xa5   : > { %844 = vmatpush.msrb.mxu1 %v2044_v29  ;;  %864 = vmatpush.msra.mxu2 %v2046_v30 }
  0xa6   : > { %884 = vmatpush.msra.mxu3 %v2115_v52  ;;  %904 = vmatpush.msra.mxu0 %v2129_v57 }
  0xa7   : > { %845 = vmatpush.msrb.mxu1 %v2050_v31  ;;  %865 = vmatpush.msra.mxu2 %v2052_v32 }
  0xa8   : > { %885 = vmatpush.msra.mxu3 %v2127_v56  ;;  %905 = vmatpush.msra.mxu0 %v2139_v61 }
  0xa9   : > { %846 = vmatpush.msrb.mxu1 %v2057_v33  ;;  %866 = vmatpush.msra.mxu2 %v2059_v34 }
  0xaa   : > { %886 = vmatpush.msra.mxu3 %v2137_v60  ;;  %906 = vmatpush.msra.mxu0 %v2154_v1 }
  0xab   : > { %847 = vmatpush.msrb.mxu1 %v2063_v35  ;;  %867 = vmatpush.msra.mxu2 %v2065_v36  ;;  %v2244_v36 = vld [vmem:[#allocation4 + $0x208] sm:$0xff] }
  0xac   : > { %887 = vmatpush.msra.mxu3 %v2152_v0  ;;  %907 = vmatpush.msra.mxu0 %v2166_v5  ;;  %2713 = vst [vmem:[#allocation53_spill] sm:$0xff] %v2244_v36 }
  0xad   : > { %848 = vmatpush.msrb.mxu1 %v2069_v37  ;;  %868 = vmatpush.msra.mxu2 %v2071_v38  ;;  %v2240_v38 = vld [vmem:[#allocation4 + $0x70] sm:$0xff] }
  0xae   : > { %888 = vmatpush.msra.mxu3 %v2164_v4  ;;  %908 = vmatpush.msra.mxu0 %v2178_v25  ;;  %2712 = vst [vmem:[#allocation52_spill] sm:$0xff] %v2240_v38 }
  0xaf   : > { %849 = vmatpush.msrb.mxu1 %v2075_v39  ;;  %869 = vmatpush.msra.mxu2 %v2077_v40  ;;  %v411_v40 = vlaneseq  ;;  %v833_v39 = vld.sshfl [vmem:[#allocation1 + $0x8] sm:$0xff pattern:$0x75316420] }
  0xb0   : > { %889 = vmatpush.msra.mxu3 %v2176_v24 }
  0xb1   : > { %850 = vmatpush.msrb.mxu1 %v2081_v41  ;;  %870 = vmatpush.msra.mxu2 %v2083_v42  ;;  %v2204_v42 = vld [vmem:[#allocation4 + $0x250] sm:$0xff]  ;;  %v832_v41 = vld.sshfl [vmem:[#allocation1] sm:$0xff pattern:$0x75316420] }
  0xb2   : > { %2707 = vst [vmem:[#allocation47_spill] sm:$0xff] %v2204_v42 }
  0xb3   : > { %851 = vmatpush.msrb.mxu1 %v2087_v43  ;;  %871 = vmatpush.msra.mxu2 %v2089_v44  ;;  %v2202_v44 = vld [vmem:[#allocation4 + $0xb8] sm:$0xff] }
  0xb4   : > { %2706 = vst [vmem:[#allocation46_spill] sm:$0xff] %v2202_v44 }
  0xb5   : > { %852 = vmatpush.msrb.mxu1 %v2093_v45  ;;  %872 = vmatpush.msra.mxu2 %v2095_v46  ;;  %v2200_v46 = vld [vmem:[#allocation4 + $0x1e8] sm:$0xff] }
  0xb7   : > { %853 = vmatpush.msrb.mxu1 %v2099_v47  ;;  %873 = vmatpush.msra.mxu2 %v2101_v48  ;;  %v2196_v48 = vld [vmem:[#allocation4 + $0x50] sm:$0xff] }
  0xb8   : > { %v2269_v47 = vld [vmem:[#allocation4 + $0x10] sm:$0xff] }
  0xb9   : > { %854 = vmatpush.msrb.mxu1 %v2105_v49  ;;  %874 = vmatpush.msra.mxu2 %v2113_v51  ;;  %v2194_v51 = vld [vmem:[#allocation4 + $0x268] sm:$0xff]  ;;  %v1865_v49 = vmov 0.0   ;;  %2720 = vst [vmem:[#allocation60_spill] sm:$0xff] %v2269_v47 }
  0xba   : > { %2705 = vst [vmem:[#allocation45_spill] sm:$0xff] %v2194_v51 }
  0xbb   : > { %919 = vmatpush.msra.mxu1 %v2109_v50  ;;  %939 = vmatpush.msrb.mxu2 %v2123_v55  ;;  %v2188_v55 = vld [vmem:[#allocation4 + $0x200] sm:$0xff] }
  0xbc   : > { %909 = vmatpush.msra.mxu0 %v2188_v55  ;;  %v2263_v50 = vld [vmem:[#allocation4 + $0x1c0] sm:$0xff] }
  0xbd   : > { %920 = vmatpush.msra.mxu1 %v2121_v54  ;;  %940 = vmatpush.msrb.mxu2 %v2135_v59  ;;  %v2186_v59 = vld [vmem:[#allocation4 + $0x68] sm:$0xff]  ;;  %v2257_v54 = vld [vmem:[#allocation4 + $0x1d8] sm:$0xff]  ;;  %2719 = vst [vmem:[#allocation59_spill] sm:$0xff] %v2263_v50 }
  0xbe   : > { %890 = vmatpush.msra.mxu3 %v2186_v59  ;;  %910 = vmatpush.msra.mxu0 %v2200_v46  ;;  %2717 = vst [vmem:[#allocation57_spill] sm:$0xff] %v2257_v54 }
  0xbf   : > { %921 = vmatpush.msra.mxu1 %v2131_v58  ;;  %941 = vmatpush.msrb.mxu2 %v2145_v63  ;;  %v2184_v63 = vld [vmem:[#allocation4 + $0x280] sm:$0xff]  ;;  %v2252_v58 = vld [vmem:[#allocation4 + $0x1f0] sm:$0xff] }
  0xc0   : > { %2703 = vst [vmem:[#allocation43_spill] sm:$0xff] %v2184_v63  ;;  %891 = vmatpush.msra.mxu3 %v2196_v48 }
  0xc1   : > { %922 = vmatpush.msra.mxu1 %v2143_v62  ;;  %942 = vmatpush.msrb.mxu2 %v2160_v3  ;;  %v2180_v3 = vld [vmem:[#allocation4 + $0xe8] sm:$0xff]  ;;  %v412_v62 = vand.u32 127, %v411_v40  ;;  %2715 = vst [vmem:[#allocation55_spill] sm:$0xff] %v2252_v58  ;;  %v2255_v40 = vld [vmem:[#allocation4 + $0x40] sm:$0xff] }
  0xc2   : > { %2702 = vst [vmem:[#allocation42_spill] sm:$0xff] %v2180_v3 }
  0xc3   : > { %923 = vmatpush.msra.mxu1 %v2156_v2  ;;  %943 = vmatpush.msrb.mxu2 %v2172_v9  ;;  %v2192_v9 = vld [vmem:[#allocation4 + $0xd0] sm:$0xff]  ;;  %v2232_v2 = vld [vmem:[#allocation4 + $0x220] sm:$0xff]  ;;  %v413_v34 = vadd.s32 128, %v412_v62  ;;  %2716 = vst [vmem:[#allocation56_spill] sm:$0xff] %v2255_v40  ;;  %v418_v32 = vand.u32 15, %v412_v62  ;;  %v2271_v62 = vld [vmem:[#allocation4 + $0x1a8] sm:$0xff] }
  0xc4   : > { %2704 = vst [vmem:[#allocation44_spill] sm:$0xff] %v2192_v9 }
  0xc5   : > { %924 = vmatpush.msra.mxu1 %v2168_v8  ;;  %944 = vmatpush.msrb.mxu2 %v2184_v63  ;;  %v2212_v63 = vld [vmem:[#allocation4 + $0x38] sm:$0xff]  ;;  %v2216_v8 = vld [vmem:[#allocation4 + $0xa0] sm:$0xff]  ;;  %2711 = vst [vmem:[#allocation51_spill] sm:$0xff] %v2232_v2  ;;  %vm438_vm2 = vcmp.ne.s32.totalorder %v418_v32, 0  ;;  %vm444_vm4 = vcmp.ne.s32.totalorder %v418_v32, 15 }
  0xc6   : > { %2708 = vst [vmem:[#allocation48_spill] sm:$0xff] %v2216_v8  ;;  %892 = vmatpush.msra.mxu3 %v2212_v63  ;;  %v2267_v30 = vsel %vm438_vm2, 1.0, %v1865_v49  ;;  %vm1048_vm2 = vcmask 1031168  }
  0xc7   : > { %925 = vmatpush.msra.mxu1 %v2180_v3  ;;  %945 = vmatpush.msrb.mxu2 %v2194_v51  ;;  %v2214_v3 = vld [vmem:[#allocation4 + $0x1d0] sm:$0xff]  ;;  %v2224_v51 = vld [vmem:[#allocation4 + $0x20] sm:$0xff]  ;;  %2721 = vst [vmem:[#allocation61_spill] sm:$0xff] %v2271_v62 }
  0xc8   : > { %911 = vmatpush.msra.mxu0 %v2214_v3  ;;  %893 = vmatpush.msra.mxu3 %v2224_v51 }
  0xc9   : > { %926 = vmatpush.msra.mxu1 %v2192_v9  ;;  %946 = vmatpush.msrb.mxu2 %v2204_v42  ;;  %v2220_v9 = vld [vmem:[#allocation4 + $0x238] sm:$0xff]  ;;  %v2228_v42 = vld [vmem:[#allocation4 + $0x88] sm:$0xff] }
  0xca   : > { %2709 = vst [vmem:[#allocation49_spill] sm:$0xff] %v2220_v9 }
  0xcb   : > { %927 = vmatpush.msra.mxu1 %v2202_v44  ;;  %947 = vmatpush.msrb.mxu2 %v2220_v9  ;;  %v2226_v44 = vld [vmem:[#allocation4 + $0x1b8] sm:$0xff]  ;;  %2710 = vst [vmem:[#allocation50_spill] sm:$0xff] %v2228_v42  ;;  %v2238_v9 = vld [vmem:[#allocation4 + $0x1a0] sm:$0xff] }
  0xcc   : > { %912 = vmatpush.msra.mxu0 %v2226_v44 }
  0xcd   : > { %928 = vmatpush.msra.mxu1 %v2216_v8  ;;  %948 = vmatpush.msrb.mxu2 %v2232_v2  ;;  %v2236_v8 = vld [vmem:[#allocation4 + $0x8] sm:$0xff]  ;;  %v2250_v2 = vld [vmem:[#allocation4 + $0x58] sm:$0xff] }
  0xce   : > { %894 = vmatpush.msra.mxu3 %v2236_v8  ;;  %913 = vmatpush.msra.mxu0 %v2238_v9  ;;  %2714 = vst [vmem:[#allocation54_spill] sm:$0xff] %v2250_v2 }
  0xcf   : > { %929 = vmatpush.msra.mxu1 %v2228_v42  ;;  %949 = vmatpush.msrb.mxu2 %v2244_v36  ;;  %v2248_v42 = vld [vmem:[#allocation4 + $0x188] sm:$0xff] }
  0xd0   : > { %914 = vmatpush.msra.mxu0 %v2248_v42  ;;  %v2261_v36 = vld [vmem:[#allocation4 + $0x28] sm:$0xff] }
  0xd1   : > { %930 = vmatpush.msra.mxu1 %v2240_v38  ;;  %950 = vmatpush.msrb.mxu2 %v2252_v58  ;;  %v425_v38 = vand.u32 15, %v413_v34  ;;  %2718 = vst [vmem:[#allocation58_spill] sm:$0xff] %v2261_v36  ;;  %v1610_v58 = vsel %vm444_vm4, 1.0, %v1865_v49  ;;  %vm1138_vm4 = vcmask 588800  }
  0xd3   : > { %931 = vmatpush.msra.mxu1 %v2250_v2  ;;  %951 = vmatpush.msrb.mxu2 %v2257_v54  ;;  %vm439_vm3 = vcmp.ne.s32.totalorder %v425_v38, 0  ;;  %v2281_v54 = vld [vmem:[#allocation4 + $0x190] sm:$0xff]  ;;  %vm445_vm5 = vcmp.ne.s32.totalorder %v425_v38, 15 }
  0xd4   : > { %v2273_v2 = vsel %vm439_vm3, 1.0, %v1865_v49  ;;  %2722 = vst [vmem:[#allocation62_spill] sm:$0xff] %v2281_v54  ;;  %vm1034_vm3 = vcmask 1039360  }
  0xd5   : > { %932 = vmatpush.msra.mxu1 %v2255_v40  ;;  %952 = vmatpush.msrb.mxu2 %v2263_v50  ;;  %v1686_v34 = vpack.i.bf16 %v2273_v2, %v2267_v30  ;;  %v1611_v40 = vsel %vm445_vm5, 1.0, %v1865_v49 }
  0xd7   : > { %933 = vmatpush.msra.mxu1 %v2261_v36  ;;  %953 = vmatpush.msrb.mxu2 %v2271_v62  ;;  %v1681_v36 = vpack.i.bf16 %v1611_v40, %v1610_v58  ;;  %v824_v58 = vpop.permute.xlu0 %823 }
  0xd8   : > { %1687 = vrot.lane.b32.xlu1 %v1686_v34, %s1866_s24  ;;  %1697 = vrot.lane.b32.xlu2 %v1686_v34, %s1867_s25 }
  0xd9   : > { %934 = vmatpush.msra.mxu1 %v2269_v47  ;;  %954 = vmatpush.msrb.mxu2 %v2281_v54 }
  0xda   : > { %1682 = vrot.lane.b32.xlu0 %v1681_v36, %s1868_s26 }
  0xe0   : > { %1692 = vrot.lane.b32.xlu1 %v1681_v36, %s1869_s27  ;;  %1702 = vrot.lane.b32.xlu2 %v1681_v36, %s1870_s28 }
 0x114   : > { %v695_v47 = vpop.f32.mrf.mxu0 }
 0x116   : > { %v633_v50 = vpop.f32.mrf.mxu1 }
 0x11a   : > { %v675_v62 = vpop.f32.mrf.mxu3 }
 0x11b   : > { %v676_v32 = vadd.f32 %v675_v62, %v633_v50 }
 0x11c   : > { %v653_v27 = vpop.f32.mrf.mxu2 }
 0x11d   : > { %v696_v38 = vadd.f32 %v695_v47, %v653_v27 }
 0x11e   : > { %v734_v45 = vpop.f32.mrf.mxu1 }
 0x11f   : > { %v757_v23 = vadd.f32 %v734_v45, %v676_v32  ;;  %v815_v40 = vpop.f32.mrf.mxu0 }
 0x124   : > { %v754_v54 = vpop.f32.mrf.mxu2 }
 0x125   : > { %v758_v43 = vadd.f32 %v754_v54, %v696_v38  ;;  %v795_v49 = vpop.f32.mrf.mxu3 }
 0x126   : > { %v818_v34 = vadd.f32 %v795_v49, %v757_v23 }
 0x127   : > { %v819_v19 = vadd.f32 %v815_v40, %v758_v43 }
 0x128   : > { %v826_v15 = vadd.f32 %v824_v58, %v818_v34 }
 0x129   : > { %v827_v11 = vadd.f32 %v824_v58, %v819_v19 }
 0x12a   : > { %v837_v37 = vsel %vm836_vm6, %v826_v15, %v832_v41 }
 0x12b   : > { %855 = vmatmul.f32.vlgmr.msrb.gmra.mxu1 %v837_v37  ;;  %895 = vmatmul.f32.vlgmr.msra.gmra.mxu3 %v837_v37  ;;  %v838_v36 = vsel %vm836_vm6, %v827_v11, %v833_v39 }
 0x12c   : > { %875 = vmatmul.f32.vlgmr.msra.gmra.mxu2 %v838_v36  ;;  %915 = vmatmul.f32.vlgmr.msra.gmra.mxu0 %v838_v36 }
 0x12d   : > { %1228 = vmatpush.msrb.mxu1 %v1982_v6  ;;  %1248 = vmatpush.msra.mxu2 %v1984_v7 }
 0x12f   : > { %1229 = vmatpush.msrb.mxu1 %v1993_v12  ;;  %1249 = vmatpush.msra.mxu2 %v1996_v13 }
 0x131   : > { %1230 = vmatpush.msrb.mxu1 %v2006_v16  ;;  %1250 = vmatpush.msra.mxu2 %v2008_v17 }
 0x132   : > { %v1698_v13 = vpop.permute.xlu2 %1697 }
 0x133   : > { %935 = vmatmul.f32.vlgmr.msra.gmra.mxu1 %v837_v37  ;;  %1251 = vmatpush.msra.mxu2 %v2020_v21  ;;  %v2363_v54 = vunpack.i.l.bf16 %v1698_v13 }
 0x134   : > { %955 = vmatmul.f32.vlgmr.msrb.gmra.mxu2 %v838_v36  ;;  %1231 = vmatpush.msrb.mxu1 %v2018_v20 }
 0x135   : > { %1252 = vmatpush.msra.mxu2 %v2117_v53  ;;  %v2361_v53 = vunpack.i.h.bf16 %v1698_v13 }
 0x136   : > { %1232 = vmatpush.msrb.mxu1 %v2040_v28 }
 0x137   : > { %1253 = vmatpush.msra.mxu2 %v2129_v57 }
 0x138   : > { %1233 = vmatpush.msrb.mxu1 %v2115_v52 }
 0x139   : > { %1254 = vmatpush.msra.mxu2 %v2139_v61 }
 0x13a   : > { %1234 = vmatpush.msrb.mxu1 %v2127_v56  ;;  %v1703_v50 = vpop.permute.xlu2 %1702 }
 0x13b   : > { %1255 = vmatpush.msra.mxu2 %v2154_v1  ;;  %v2367_v57 = vunpack.i.h.bf16 %v1703_v50 }
 0x13c   : > { %1235 = vmatpush.msrb.mxu1 %v2137_v60 }
 0x13d   : > { %1256 = vmatpush.msra.mxu2 %v2166_v5 }
 0x13e   : > { %1236 = vmatpush.msrb.mxu1 %v2152_v0 }
 0x13f   : > { %1257 = vmatpush.msra.mxu2 %v2178_v25 }
 0x140   : > { %1237 = vmatpush.msrb.mxu1 %v2164_v4 }
 0x141   : > { %1258 = vmatpush.msra.mxu2 %v2188_v55 }
 0x142   : > { %1238 = vmatpush.msrb.mxu1 %v2176_v24 }
 0x143   : > { %1259 = vmatpush.msra.mxu2 %v2200_v46 }
 0x144   : > { %1239 = vmatpush.msrb.mxu1 %v2186_v59  ;;  %v2369_v59 = vunpack.i.l.bf16 %v1703_v50  ;;  %v1132_v50 = vld [vmem:[%s2608_s7] sm:$0xf] }
 0x145   : > { %1260 = vmatpush.msra.mxu2 %v2214_v3 }
 0x146   : > { %1240 = vmatpush.msrb.mxu1 %v2196_v48  ;;  %v2382_v4 = vsel %vm967_vm11, %v2369_v59, %v2367_v57 }
 0x147   : > { %1261 = vmatpush.msra.mxu2 %v2226_v44 }
 0x148   : > { %1241 = vmatpush.msrb.mxu1 %v2212_v63  ;;  %v2375_v63 = vsel %vm981_vm10, %v2363_v54, %v2361_v53 }
 0x149   : > { %1262 = vmatpush.msra.mxu2 %v2238_v9 }
 0x14a   : > { %1242 = vmatpush.msrb.mxu1 %v2224_v51  ;;  %v1688_v6 = vpop.permute.xlu1 %1687 }
 0x14b   : > { %1263 = vmatpush.msra.mxu2 %v2248_v42  ;;  %v2330_v28 = vunpack.i.h.bf16 %v1688_v6  ;;  %v2332_v37 = vunpack.i.l.bf16 %v1688_v6 }
 0x14c   : > { %1243 = vmatpush.msrb.mxu1 %v2236_v8  ;;  %v1683_v7 = vpop.permute.xlu0 %1682 }
 0x14d   : > { %v2318_v11 = vunpack.i.h.bf16 %v1683_v7  ;;  %v2320_v12 = vunpack.i.l.bf16 %v1683_v7  ;;  %v2348_v46 = vsel %vm1005_vm8, %v2332_v37, %v2330_v28  ;;  %vm1445_vm8 = vcmask 293888  }
 0x14f   : > { %v2324_v19 = vsel %vm1017_vm7, %v2320_v12, %v2318_v11 }
 0x152   : > { %v1693_v23 = vpop.permute.xlu1 %1692 }
 0x153   : > { %v2340_v43 = vunpack.i.h.bf16 %v1693_v23  ;;  %v2342_v44 = vunpack.i.l.bf16 %v1693_v23 }
 0x155   : > { %v2355_v48 = vsel %vm993_vm9, %v2342_v44, %v2340_v43 }
 0x1a8   : > { %v856_v17 = vpop.f32.mrf.mxu1 }
 0x1a9   : > { %v916_v15 = vpop.f32.mrf.mxu0 }
 0x1ae   : > { %v896_v16 = vpop.f32.mrf.mxu3 }
 0x1af   : > { %v2326_v20 = vadd.f32 %v916_v15, %v896_v16  ;;  %v876_v21 = vpop.f32.mrf.mxu2 }
 0x1b0   : > { %v2328_v27 = vadd.f32 %v876_v21, %v856_v17  ;;  %v936_v0 = vpop.f32.mrf.mxu1 }
 0x1b1   : > { %v1023_v42 = vmul.f32 %v2324_v19, %v2326_v20  ;;  %v1011_v51 = vmul.f32 %v2348_v46, %v2326_v20  ;;  %v999_v56 = vmul.f32 %v2355_v48, %v2326_v20  ;;  %v987_v5 = vmul.f32 %v2375_v63, %v2326_v20 }
 0x1b2   : > { %v1716_v39 = vpack.i.bf16 %v2326_v20, %v2328_v27  ;;  %v1022_v41 = vmul.f32 %v2320_v12, %v2328_v27  ;;  %v1010_v47 = vmul.f32 %v2332_v37, %v2328_v27  ;;  %v998_v52 = vmul.f32 %v2342_v44, %v2328_v27 }
 0x1b3   : > { %v986_v3 = vmul.f32 %v2363_v54, %v2328_v27  ;;  %v972_v8 = vmul.f32 %v2369_v59, %v2328_v27  ;;  %v973_v25 = vmul.f32 %v2382_v4, %v2326_v20 }
 0x1b4   : > { %1717 = vrot.lane.b32.xlu2 %v1716_v39, %s1871_s29  ;;  %1707 = vrot.lane.b32.xlu1 %v1716_v39, %s1872_s11  ;;  %v1721_v45 = vpack.i.bf16 %v1023_v42, %v1022_v41  ;;  %v1726_v55 = vpack.i.bf16 %v1011_v51, %v1010_v47  ;;  %v1731_v61 = vpack.i.bf16 %v999_v56, %v998_v52 }
 0x1b5   : > { %v1736_v24 = vpack.i.bf16 %v987_v5, %v986_v3  ;;  %v1741_v62 = vpack.i.bf16 %v973_v25, %v972_v8 }
 0x1b6   : > { %1722 = vrot.lane.b32.xlu0 %v1721_v45, %s1873_s12 }
 0x1b7   : > { %v956_v60 = vpop.f32.mrf.mxu2 }
 0x1b8   : > { %v957_v1 = vadd.f32 %v956_v60, %v936_v0 }
 0x1ba   : > { %v1024_v9 = vmul.f32 %v2318_v11, %v957_v1  ;;  %v1012_v32 = vmul.f32 %v2330_v28, %v957_v1  ;;  %v1000_v38 = vmul.f32 %v2340_v43, %v957_v1  ;;  %v988_v49 = vmul.f32 %v2361_v53, %v957_v1 }
 0x1bb   : > { %v974_v58 = vmul.f32 %v2367_v57, %v957_v1 }
 0x1bc   : > { %1712 = vrot.lane.b32.xlu1 %v1716_v39, %s1874_s14  ;;  %1727 = vrot.lane.b32.xlu2 %v1726_v55, %s1875_s15 }
 0x1be   : > { %1732 = vrot.lane.b32.xlu0 %v1731_v61, %s1876_s16 }
 0x1c4   : > { %1124 = vrot.lane.b32.xlu1 %v1024_v9, %s1873_s12  ;;  %1737 = vrot.lane.b32.xlu2 %v1736_v24, %s1877_s18 }
 0x1c6   : > { %1742 = vrot.lane.b32.xlu0 %v1741_v62, %s1878_s19 }
 0x1cc   : > { %1099 = vrot.lane.b32.xlu1 %v1012_v32, %s1875_s15  ;;  %1085 = vrot.lane.b32.xlu2 %v1000_v38, %s1876_s16 }
 0x1ce   : > { %1110 = vrot.lane.b32.xlu0 %v957_v1, %s1872_s11 }
 0x1d4   : > { %1060 = vrot.lane.b32.xlu1 %v988_v49, %s1877_s18  ;;  %1046 = vrot.lane.b32.xlu2 %v974_v58, %s1878_s19 }
 0x1d6   : > { %1071 = vrot.lane.b32.xlu0 %v957_v1, %s1874_s14 }
 0x1dc   : > { %1135 = vperm.xlu1 %1746, %v1132_v50   ;;  %v2734_v50 = vld [vmem:[#allocation13_spill] sm:$0xff] }
 0x1de   : > { %1032 = vrot.lane.b32.xlu0 %v957_v1, %s1871_s29 }
 0x20e   : > { %v2405_v40 = vpop.permute.xlu2 %1717 }
 0x20f   : > { %v1720_v24 = vunpack.i.h.bf16 %v2405_v40  ;;  %v1719_v25 = vunpack.i.l.bf16 %v2405_v40 }
 0x211   : > { %v1035_v49 = vsel %vm1034_vm3, %v1719_v25, %v1720_v24  ;;  %v2748_v25 = vld [vmem:[#allocation42_spill] sm:$0xff] }
 0x216   : > { %v2407_v34 = vpop.permute.xlu2 %1727 }
 0x217   : > { %v1730_v17 = vunpack.i.h.bf16 %v2407_v34  ;;  %v1729_v21 = vunpack.i.l.bf16 %v2407_v34  ;;  %v959_v34 = vmul.f32 %v2267_v30, %v2328_v27 }
 0x219   : > { %v1102_v42 = vsel %vm1101_vm14, %v1729_v21, %v1730_v17 }
 0x21e   : > { %v1738_v45 = vpop.permute.xlu2 %1737 }
 0x21f   : > { %v1740_v60 = vunpack.i.h.bf16 %v1738_v45  ;;  %v1739_v61 = vunpack.i.l.bf16 %v1738_v45  ;;  %v2732_v45 = vld [vmem:[#allocation12_spill] sm:$0xff] }
 0x221   : > { %v1063_v8 = vsel %vm1062_vm1, %v1739_v61, %v1740_v60  ;;  %v2740_v61 = vld [vmem:[#allocation34_spill] sm:$0xff] }
 0x226   : > { %v1708_v36 = vpop.permute.xlu1 %1707 }
 0x227   : > { %v1710_v7 = vunpack.i.h.bf16 %v1708_v36  ;;  %v1709_v13 = vunpack.i.l.bf16 %v1708_v36  ;;  %v1131_v36 = vld [vmem:[%s2607_s6] sm:$0xf] }
 0x228   : > { %v1723_v6 = vpop.permute.xlu0 %1722 }
 0x229   : > { %v1725_v15 = vunpack.i.h.bf16 %v1723_v6  ;;  %v1724_v16 = vunpack.i.l.bf16 %v1723_v6  ;;  %v1113_v39 = vsel %vm1112_vm13, %v1709_v13, %v1710_v7  ;;  %v1086_v13 = vpop.permute.xlu2 %1085 }
 0x22b   : > { %v1127_v23 = vsel %vm1126_vm12, %v1724_v16, %v1725_v15 }
 0x22c   : > { %1149 = vmatpush.msrb.mxu3 %v1127_v23  ;;  %v2723_v23 = vld [vmem:[#allocation17_spill] sm:$0xff] }
 0x22e   : > { %v1713_v41 = vpop.permute.xlu1 %1712  ;;  %1150 = vmatpush.msrb.mxu3 %v1113_v39  ;;  %v2725_v39 = vld [vmem:[#allocation19_spill] sm:$0xff] }
 0x22f   : > { %v1715_v51 = vunpack.i.h.bf16 %v1713_v41  ;;  %v1714_v52 = vunpack.i.l.bf16 %v1713_v41  ;;  %v2728_v41 = vld [vmem:[#allocation10_spill] sm:$0xff] }
 0x230   : > { %1151 = vmatpush.msrb.mxu3 %v1102_v42  ;;  %v1733_v47 = vpop.permute.xlu0 %1732  ;;  %v2729_v42 = vld [vmem:[#allocation23_spill] sm:$0xff] }
 0x231   : > { %v1735_v55 = vunpack.i.h.bf16 %v1733_v47  ;;  %v1734_v56 = vunpack.i.l.bf16 %v1733_v47  ;;  %v1074_v1 = vsel %vm1073_vm0, %v1714_v52, %v1715_v51  ;;  %v2733_v47 = vld [vmem:[#allocation27_spill] sm:$0xff]  ;;  %v2736_v52 = vld [vmem:[#allocation30_spill] sm:$0xff] }
 0x233   : > { %v1088_v0 = vsel %vm1087_vm15, %v1734_v56, %v1735_v55  ;;  %v1089_v27 = vsel %vm1087_vm15, %v1735_v55, %v1086_v13  ;;  %v2737_v55 = vld [vmem:[#allocation14_spill] sm:$0xff]  ;;  %v2738_v56 = vld [vmem:[#allocation32_spill] sm:$0xff]  ;;  %v2758_v13 = vld [vmem:[#allocation35_spill] sm:$0xff] }
 0x234   : > { %1152 = vmatpush.msrb.mxu3 %v1088_v0  ;;  %v2741_v0 = vld [vmem:[#allocation16_spill] sm:$0xff] }
 0x236   : > { %v1125_v3 = vpop.permute.xlu1 %1124  ;;  %1153 = vmatpush.msrb.mxu3 %v1074_v1  ;;  %v2742_v1 = vld [vmem:[#allocation36_spill] sm:$0xff] }
 0x237   : > { %v1128_v5 = vsel %vm1126_vm12, %v1725_v15, %v1125_v3  ;;  %v2743_v3 = vld [vmem:[#allocation18_spill] sm:$0xff] }
 0x238   : > { %1154 = vmatpush.msrb.mxu3 %v1063_v8  ;;  %1169 = vmatpush.msrb.mxu0 %v1128_v5  ;;  %v1743_v9 = vpop.permute.xlu0 %1742  ;;  %v2744_v5 = vld [vmem:[#allocation38_spill] sm:$0xff]  ;;  %v2745_v8 = vld [vmem:[#allocation20_spill] sm:$0xff] }
 0x239   : > { %v1745_v62 = vunpack.i.h.bf16 %v1743_v9  ;;  %v1744_v32 = vunpack.i.l.bf16 %v1743_v9  ;;  %v2746_v9 = vld [vmem:[#allocation40_spill] sm:$0xff] }
 0x23b   : > { %v1049_v38 = vsel %vm1048_vm2, %v1744_v32, %v1745_v62  ;;  %v2750_v32 = vld [vmem:[#allocation44_spill] sm:$0xff] }
 0x23c   : > { %1155 = vmatpush.msrb.mxu3 %v1049_v38  ;;  %v2751_v38 = vld [vmem:[#allocation26_spill] sm:$0xff] }
 0x23e   : > { %v1100_v58 = vpop.permute.xlu1 %1099  ;;  %1156 = vmatpush.msrb.mxu3 %v1035_v49  ;;  %v2752_v49 = vld [vmem:[#allocation46_spill] sm:$0xff] }
 0x23f   : > { %v1103_v15 = vsel %vm1101_vm14, %v1730_v17, %v1100_v58  ;;  %v1047_v17 = vpop.permute.xlu2 %1046  ;;  %v2753_v58 = vld [vmem:[#allocation28_spill] sm:$0xff] }
 0x240   : > { %v1111_v6 = vpop.permute.xlu0 %1110  ;;  %1157 = vmatpush.msrb.mxu3 %v959_v34  ;;  %v2754_v34 = vld [vmem:[#allocation48_spill] sm:$0xff] }
 0x241   : > { %1622 = vmatmul.msk.f32.vlgmr.msrb.gmra.mxu3 %vm1138_vm4, %v1131_v36  ;;  %v1114_v40 = vsel %vm1112_vm13, %v1710_v7, %v1111_v6  ;;  %v2756_v6 = vld [vmem:[#allocation33_spill] sm:$0xff] }
 0x242   : > { %1170 = vmatpush.msrb.mxu0 %v1114_v40  ;;  %1188 = vmatpush.msra.mxu3 %v1988_v10  ;;  %v2757_v40 = vld [vmem:[#allocation50_spill] sm:$0xff] }
 0x244   : > { %1171 = vmatpush.msrb.mxu0 %v1103_v15  ;;  %1189 = vmatpush.msra.mxu3 %v2000_v14  ;;  %v1050_v14 = vsel %vm1048_vm2, %v1745_v62, %v1047_v17  ;;  %v2749_v62 = vld [vmem:[#allocation24_spill] sm:$0xff]  ;;  %v2765_v17 = vld [vmem:[#allocation58_spill] sm:$0xff] }
 0x245   : > { %v2759_v15 = vld [vmem:[#allocation52_spill] sm:$0xff] }
 0x246   : > { %1172 = vmatpush.msrb.mxu0 %v1089_v27  ;;  %1190 = vmatpush.msra.mxu3 %v2010_v18  ;;  %v1061_v16 = vpop.permute.xlu1 %1060  ;;  %v2760_v27 = vld [vmem:[#allocation37_spill] sm:$0xff] }
 0x247   : > { %v1064_v10 = vsel %vm1062_vm1, %v1740_v60, %v1061_v16  ;;  %v2739_v60 = vld [vmem:[#allocation15_spill] sm:$0xff]  ;;  %v2761_v16 = vld [vmem:[#allocation54_spill] sm:$0xff] }
 0x248   : > { %v1072_v21 = vpop.permute.xlu0 %1071  ;;  %1191 = vmatpush.msra.mxu3 %v2022_v22 }
 0x249   : > { %v1075_v7 = vsel %vm1073_vm0, %v1715_v51, %v1072_v21  ;;  %v2735_v51 = vld [vmem:[#allocation29_spill] sm:$0xff]  ;;  %v2762_v21 = vld [vmem:[#allocation39_spill] sm:$0xff] }
 0x24a   : > { %1173 = vmatpush.msrb.mxu0 %v1075_v7  ;;  %1192 = vmatpush.msra.mxu3 %v2033_v26  ;;  %v960_v26 = vmul.f32 %v2273_v2, %v2326_v20  ;;  %v2730_v20 = vld [vmem:[#allocation11_spill] sm:$0xff]  ;;  %v2763_v7 = vld [vmem:[#allocation56_spill] sm:$0xff] }
 0x24c   : > { %1174 = vmatpush.msrb.mxu0 %v1064_v10  ;;  %1193 = vmatpush.msra.mxu3 %v2044_v29  ;;  %v2724_v29 = vld [vmem:[#allocation8_spill] sm:$0xff]  ;;  %v2764_v10 = vld [vmem:[#allocation41_spill] sm:$0xff] }
 0x24e   : > { %1175 = vmatpush.msrb.mxu0 %v1050_v14  ;;  %1194 = vmatpush.msra.mxu3 %v2050_v31  ;;  %v2726_v31 = vld [vmem:[#allocation9_spill] sm:$0xff]  ;;  %v2766_v14 = vld [vmem:[#allocation43_spill] sm:$0xff] }
 0x250   : > { %v1033_v18 = vpop.permute.xlu0 %1032  ;;  %1195 = vmatpush.msra.mxu3 %v2057_v33  ;;  %v2727_v33 = vld [vmem:[#allocation21_spill] sm:$0xff] }
 0x251   : > { %v1036_v22 = vsel %vm1034_vm3, %v1720_v24, %v1033_v18  ;;  %v2747_v24 = vld [vmem:[#allocation22_spill] sm:$0xff]  ;;  %v2767_v18 = vld [vmem:[#allocation60_spill] sm:$0xff] }
 0x252   : > { %1176 = vmatpush.msrb.mxu0 %v1036_v22  ;;  %1196 = vmatpush.msra.mxu3 %v2063_v35  ;;  %v2731_v35 = vld [vmem:[#allocation25_spill] sm:$0xff] }
 0x253   : > { %v2768_v22 = vld [vmem:[#allocation45_spill] sm:$0xff] }
 0x254   : > { %1177 = vmatpush.msrb.mxu0 %v960_v26  ;;  %1197 = vmatpush.msra.mxu3 %v2723_v23  ;;  %v2769_v26 = vld [vmem:[#allocation47_spill] sm:$0xff]  ;;  %v2770_v23 = vld [vmem:[#allocation49_spill] sm:$0xff] }
 0x255   : > { %1623 = vmatmul.msk.f32.vlgmr.msrb.gmra.mxu0 %vm1138_vm4, %v1131_v36  ;;  %v2755_v36 = vld [vmem:[#allocation31_spill] sm:$0xff] }
 0x256   : > { %1208 = vmatpush.msra.mxu0 %v2724_v29  ;;  %1198 = vmatpush.msra.mxu3 %v2725_v39  ;;  %v2771_v29 = vld [vmem:[#allocation51_spill] sm:$0xff]  ;;  %v2772_v39 = vld [vmem:[#allocation53_spill] sm:$0xff] }
 0x258   : > { %1209 = vmatpush.msra.mxu0 %v2726_v31  ;;  %1199 = vmatpush.msra.mxu3 %v2727_v33  ;;  %v2773_v31 = vld [vmem:[#allocation55_spill] sm:$0xff]  ;;  %v2774_v33 = vld [vmem:[#allocation57_spill] sm:$0xff] }
 0x25a   : > { %1210 = vmatpush.msra.mxu0 %v2728_v41  ;;  %1200 = vmatpush.msra.mxu3 %v2729_v42  ;;  %v2775_v41 = vld [vmem:[#allocation59_spill] sm:$0xff]  ;;  %v2776_v42 = vld [vmem:[#allocation61_spill] sm:$0xff] }
 0x25c   : > { %1211 = vmatpush.msra.mxu0 %v2730_v20  ;;  %1201 = vmatpush.msra.mxu3 %v2731_v35  ;;  %v2777_v20 = vld [vmem:[#allocation62_spill] sm:$0xff]  ;;  %v1136_v35 = vpop.permute.xlu1 %1135 }
 0x25e   : > { %1212 = vmatpush.msra.mxu0 %v2732_v45  ;;  %1202 = vmatpush.msra.mxu3 %v2733_v47 }
 0x260   : > { %1213 = vmatpush.msra.mxu0 %v2734_v50  ;;  %1203 = vmatpush.msra.mxu3 %v2735_v51 }
 0x262   : > { %1268 = vmatpush.msrb.mxu3 %v2736_v52  ;;  %1214 = vmatpush.msra.mxu0 %v2737_v55 }
 0x264   : > { %1269 = vmatpush.msrb.mxu3 %v2738_v56  ;;  %1215 = vmatpush.msra.mxu0 %v2739_v60 }
 0x266   : > { %1270 = vmatpush.msrb.mxu3 %v2740_v61  ;;  %1216 = vmatpush.msra.mxu0 %v2741_v0 }
 0x268   : > { %1271 = vmatpush.msrb.mxu3 %v2742_v1  ;;  %1217 = vmatpush.msra.mxu0 %v2743_v3 }
 0x26a   : > { %1272 = vmatpush.msrb.mxu3 %v2744_v5  ;;  %1218 = vmatpush.msra.mxu0 %v2745_v8 }
 0x26c   : > { %1273 = vmatpush.msrb.mxu3 %v2746_v9  ;;  %1219 = vmatpush.msra.mxu0 %v2747_v24 }
 0x26e   : > { %1274 = vmatpush.msrb.mxu3 %v2748_v25  ;;  %1220 = vmatpush.msra.mxu0 %v2749_v62 }
 0x270   : > { %1275 = vmatpush.msrb.mxu3 %v2750_v32  ;;  %1221 = vmatpush.msra.mxu0 %v2751_v38 }
 0x272   : > { %1276 = vmatpush.msrb.mxu3 %v2752_v49  ;;  %1222 = vmatpush.msra.mxu0 %v2753_v58 }
 0x274   : > { %1277 = vmatpush.msrb.mxu3 %v2754_v34  ;;  %1223 = vmatpush.msra.mxu0 %v2755_v36 }
 0x276   : > { %1288 = vmatpush.msrb.mxu0 %v2756_v6  ;;  %1278 = vmatpush.msrb.mxu3 %v2757_v40 }
 0x278   : > { %1289 = vmatpush.msrb.mxu0 %v2758_v13  ;;  %1279 = vmatpush.msrb.mxu3 %v2759_v15 }
 0x27a   : > { %1290 = vmatpush.msrb.mxu0 %v2760_v27  ;;  %1280 = vmatpush.msrb.mxu3 %v2761_v16 }
 0x27c   : > { %1291 = vmatpush.msrb.mxu0 %v2762_v21  ;;  %1281 = vmatpush.msrb.mxu3 %v2763_v7 }
 0x27e   : > { %1292 = vmatpush.msrb.mxu0 %v2764_v10  ;;  %1282 = vmatpush.msrb.mxu3 %v2765_v17 }
 0x280   : > { %1293 = vmatpush.msrb.mxu0 %v2766_v14  ;;  %1283 = vmatpush.msrb.mxu3 %v2767_v18  ;;  %v1439_v14 = vld [vmem:[%s2610_s9] sm:$0xf] }
 0x282   : > { %1294 = vmatpush.msrb.mxu0 %v2768_v22 }
 0x284   : > { %1295 = vmatpush.msrb.mxu0 %v2769_v26 }
 0x286   : > { %1296 = vmatpush.msrb.mxu0 %v2770_v23 }
 0x288   : > { %1297 = vmatpush.msrb.mxu0 %v2771_v29 }
 0x28a   : > { %1298 = vmatpush.msrb.mxu0 %v2772_v39 }
 0x28c   : > { %1299 = vmatpush.msrb.mxu0 %v2773_v31 }
 0x28e   : > { %1300 = vmatpush.msrb.mxu0 %v2774_v33 }
 0x290   : > { %1301 = vmatpush.msrb.mxu0 %v2775_v41 }
 0x292   : > { %1302 = vmatpush.msrb.mxu0 %v2776_v42 }
 0x294   : > { %1303 = vmatpush.msrb.mxu0 %v2777_v20 }
 0x2c4   : > { %v1159_v45 = vpop.f32.mrf.mxu3 }
 0x2c5   : > { %v1160_v47 = vadd.f32 %v1159_v45, %v1136_v35 }
 0x2c7   : > { %vm1182_vm5 = vcmp.gt.f32.partialorder %v1160_v47, 0.0  ;;  %v1184_v50 = vmul.f32 0.2, %v1160_v47 }
 0x2c9   : > { %v1186_v51 = vsel %vm1182_vm5, %v1160_v47, %v1184_v50 }
 0x2ca   : > { %1204 = vmatmul.f32.vlgmr.msra.gmra.mxu3 %v1186_v51  ;;  %1244 = vmatmul.f32.vlgmr.msrb.gmra.mxu1 %v1186_v51 }
 0x2d2   : > { %v1179_v52 = vpop.f32.mrf.mxu0  ;;  %1284 = vmatmul.f32.vlgmr.msrb.gmra.mxu3 %v1186_v51 }
 0x2d3   : > { %v1180_v55 = vadd.f32 %v1179_v52, %v1136_v35 }
 0x2d5   : > { %vm1183_vm7 = vcmp.gt.f32.partialorder %v1180_v55, 0.0  ;;  %v1185_v56 = vmul.f32 0.2, %v1180_v55 }
 0x2d7   : > { %v1187_v60 = vsel %vm1183_vm7, %v1180_v55, %v1185_v56 }
 0x2d8   : > { %1224 = vmatmul.f32.vlgmr.msra.gmra.mxu0 %v1187_v60  ;;  %1264 = vmatmul.f32.vlgmr.msra.gmra.mxu2 %v1187_v60 }
 0x2e0   : > { %1304 = vmatmul.f32.vlgmr.msrb.gmra.mxu0 %v1187_v60 }
 0x347   : > { %v1245_v8 = vpop.f32.mrf.mxu1 }
 0x34d   : > { %v1205_v61 = vpop.f32.mrf.mxu3 }
 0x355   : > { %v1225_v0 = vpop.f32.mrf.mxu0  ;;  %v1285_v25 = vpop.f32.mrf.mxu3 }
 0x356   : > { %v2505_v1 = vadd.f32 %v1225_v0, %v1205_v61 }
 0x358   : > { %v1322_v3 = vmul.f32 %v2320_v12, %v2505_v1  ;;  %v1319_v5 = vmul.f32 %v2332_v37, %v2505_v1 }
 0x35a   : > { %1422 = vrot.lane.b32.xlu2 %v1322_v3, %s1873_s12  ;;  %1399 = vrot.lane.b32.xlu0 %v1319_v5, %s1875_s15 }
 0x35b   : > { %v1265_v9 = vpop.f32.mrf.mxu2 }
 0x35c   : > { %v2513_v24 = vadd.f32 %v1265_v9, %v1245_v8 }
 0x35d   : > { %v1305_v62 = vpop.f32.mrf.mxu0 }
 0x35e   : > { %v1306_v32 = vadd.f32 %v1305_v62, %v1285_v25  ;;  %v1323_v38 = vmul.f32 %v2513_v24, %v2324_v19  ;;  %v1320_v12 = vmul.f32 %v2513_v24, %v2348_v46  ;;  %v1329_v36 = vrot.slane %v2513_v24, 4 }
 0x35f   : > { %v1317_v27 = vmul.f32 %v2513_v24, %v2355_v48  ;;  %v1328_v48 = vrot.slane %v2505_v1, 4 }
 0x360   : > { %v1747_v49 = vpack.i.bf16 %v1306_v32, %v2513_v24  ;;  %v1321_v37 = vmul.f32 %v2330_v28, %v1306_v32  ;;  %v1330_v34 = vrot.slane %v1306_v32, 4  ;;  %v1324_v19 = vmul.f32 %v2318_v11, %v1306_v32 }
 0x361   : > { %v1315_v40 = vmul.f32 %v2361_v53, %v1306_v32  ;;  %v1314_v28 = vmul.f32 %v2513_v24, %v2375_v63  ;;  %v1318_v46 = vmul.f32 %v2340_v43, %v1306_v32  ;;  %v1312_v13 = vmul.f32 %v2367_v57, %v1306_v32 }
 0x362   : > { %1424 = vrot.lane.b32.xlu2 %v1323_v38, %s1873_s12  ;;  %1748 = vrot.lane.b32.xlu0 %v1747_v49, %s1874_s14  ;;  %v1752_v58 = vpack.i.bf16 %v1321_v37, %v1320_v12  ;;  %v1757_v6 = vpack.i.bf16 %v1330_v34, %v1329_v36  ;;  %v1311_v11 = vmul.f32 %v2513_v24, %v2382_v4  ;;  %v1384_v10 = vrot.slane %v1317_v27, 4 }
 0x363   : > { %v1359_v15 = vrot.slane %v1315_v40, 4  ;;  %v1358_v53 = vrot.slane %v1314_v28, 4  ;;  %v1385_v16 = vrot.slane %v1318_v46, 4  ;;  %v1316_v57 = vmul.f32 %v2342_v44, %v2505_v1  ;;  %v1438_v40 = vld [vmem:[%s2609_s8] sm:$0xf] }
 0x364   : > { %1753 = vrot.lane.b32.xlu1 %v1752_v58, %s1875_s15  ;;  %v1762_v21 = vpack.i.bf16 %v1312_v13, %v1311_v11  ;;  %v1313_v4 = vmul.f32 %v2363_v54, %v2505_v1  ;;  %v1310_v44 = vmul.f32 %v2369_v59, %v2505_v1 }
 0x365   : > { %v1777_v7 = vpack.i.bf16 %v1359_v15, %v1358_v53  ;;  %v1772_v43 = vpack.i.bf16 %v1385_v16, %v1384_v10  ;;  %v1383_v63 = vrot.slane %v1316_v57, 4 }
 0x366   : > { %v1357_v17 = vrot.slane %v1313_v4, 4 }
 0x36a   : > { %1758 = vrot.lane.b32.xlu2 %v1757_v6, %s1872_s11  ;;  %1426 = vrot.lane.b32.xlu0 %v1324_v19, %s1873_s12  ;;  %v1309_v19 = vmul.f32 %v2273_v2, %v2513_v24 }
 0x36c   : > { %1768 = vrot.lane.b32.xlu1 %v1757_v6, %s1871_s29 }
 0x372   : > { %1763 = vrot.lane.b32.xlu2 %v1762_v21, %s1878_s19  ;;  %1778 = vrot.lane.b32.xlu0 %v1777_v7, %s1877_s18 }
 0x374   : > { %1773 = vrot.lane.b32.xlu1 %v1772_v43, %s1876_s16 }
 0x37a   : > { %1370 = vrot.lane.b32.xlu2 %v2505_v1, %s1874_s14  ;;  %1386 = vrot.lane.b32.xlu0 %v1383_v63, %s1876_s16  ;;  %v1308_v63 = vmul.f32 %v2267_v30, %v2505_v1 }
 0x37c   : > { %1409 = vrot.lane.b32.xlu1 %v1328_v48, %s1872_s11 }
 0x382   : > { %1331 = vrot.lane.b32.xlu0 %v1328_v48, %s1871_s29  ;;  %1360 = vrot.lane.b32.xlu2 %v1357_v17, %s1877_s18  ;;  %s410_s29 = scalar_lea.vmem %s2611_s10, %s1961_s30 }
 0x384   : > { %1344 = vrot.lane.b32.xlu1 %v1310_v44, %s1878_s19 }
 0x38c   : > { %1442 = vperm.xlu1 %1746, %v1439_v14  }
 0x3b4   : > { %v1423_v18 = vpop.permute.xlu2 %1422 }
 0x3bc   : > { %v1425_v22 = vpop.permute.xlu2 %1424 }
 0x3bd   : > { %v1428_v26 = vsel %vm1126_vm12, %v1423_v18, %v1425_v22 }
 0x3be   : > { %1624 = vmatpush.msk.msra.mxu1 %vm836_vm6, %v1428_v26 }
 0x3c4   : > { %v1759_v39 = vpop.permute.xlu2 %1758 }
 0x3c5   : > { %v1761_v59 = vunpack.i.h.bf16 %v1759_v39  ;;  %v1760_v41 = vunpack.i.l.bf16 %v1759_v39 }
 0x3c7   : > { %v1416_v47 = vsel %vm1112_vm13, %v1760_v41, %v1761_v59 }
 0x3cc   : > { %v1400_v54 = vpop.permute.xlu0 %1399  ;;  %v1764_v51 = vpop.permute.xlu2 %1763 }
 0x3cd   : > { %v1766_v0 = vunpack.i.h.bf16 %v1764_v51  ;;  %v1765_v3 = vunpack.i.l.bf16 %v1764_v51 }
 0x3cf   : > { %v1351_v37 = vsel %vm1048_vm2, %v1765_v3, %v1766_v0 }
 0x3d4   : > { %v1749_v23 = vpop.permute.xlu0 %1748  ;;  %v1371_v34 = vpop.permute.xlu2 %1370 }
 0x3d5   : > { %v1751_v55 = vunpack.i.h.bf16 %v1749_v23  ;;  %v1750_v56 = vunpack.i.l.bf16 %v1749_v23 }
 0x3d6   : > { %v1754_v29 = vpop.permute.xlu1 %1753 }
 0x3d7   : > { %v1756_v31 = vunpack.i.h.bf16 %v1754_v29  ;;  %v1755_v33 = vunpack.i.l.bf16 %v1754_v29  ;;  %v1377_v32 = vsel %vm1073_vm0, %v1750_v56, %v1751_v55  ;;  %v1376_v24 = vsel %vm1073_vm0, %v1371_v34, %v1750_v56 }
 0x3d9   : > { %v1406_v20 = vsel %vm1101_vm14, %v1755_v33, %v1756_v31  ;;  %v1405_v27 = vsel %vm1101_vm14, %v1400_v54, %v1755_v33 }
 0x3da   : > { %v1437_v50 = vsel %vm836_vm6, %v1406_v20, %v1416_v47 }
 0x3dc   : > { %v1427_v42 = vpop.permute.xlu0 %1426  ;;  %v1361_v16 = vpop.permute.xlu2 %1360 }
 0x3dd   : > { %v1429_v35 = vsel %vm1126_vm12, %v1425_v22, %v1427_v42 }
 0x3de   : > { %v1769_v45 = vpop.permute.xlu1 %1768  ;;  %1626 = vmatpush.msk.msrb.mxu2 %vm836_vm6, %v1429_v35 }
 0x3df   : > { %v1771_v8 = vunpack.i.h.bf16 %v1769_v45  ;;  %v1770_v9 = vunpack.i.l.bf16 %v1769_v45 }
 0x3e0   : > { %1485 = vmatpush.msrb.mxu2 %v1437_v50 }
 0x3e1   : > { %v1338_v58 = vsel %vm1034_vm3, %v1770_v9, %v1771_v8 }
 0x3e2   : > { %v1431_v46 = vsel %vm836_vm6, %v1309_v19, %v1338_v58 }
 0x3e4   : > { %v1779_v52 = vpop.permute.xlu0 %1778 }
 0x3e5   : > { %v1781_v60 = vunpack.i.h.bf16 %v1779_v52  ;;  %v1780_v61 = vunpack.i.l.bf16 %v1779_v52 }
 0x3e6   : > { %v1774_v5 = vpop.permute.xlu1 %1773 }
 0x3e7   : > { %v1776_v25 = vunpack.i.h.bf16 %v1774_v5  ;;  %v1775_v62 = vunpack.i.l.bf16 %v1774_v5  ;;  %v1367_v49 = vsel %vm1062_vm1, %v1780_v61, %v1781_v60  ;;  %v1366_v43 = vsel %vm1062_vm1, %v1361_v16, %v1780_v61 }
 0x3e8   : > { %v1433_v6 = vsel %vm836_vm6, %v1351_v37, %v1367_v49 }
 0x3e9   : > { %v1393_v38 = vsel %vm1087_vm15, %v1775_v62, %v1776_v25 }
 0x3ea   : > { %v1435_v12 = vsel %vm836_vm6, %v1377_v32, %v1393_v38 }
 0x3eb   : > { %1486 = vmatpush.msrb.mxu2 %v1435_v12 }
 0x3ec   : > { %v1387_v36 = vpop.permute.xlu0 %1386 }
 0x3ed   : > { %1487 = vmatpush.msrb.mxu2 %v1433_v6  ;;  %v1392_v13 = vsel %vm1087_vm15, %v1387_v36, %v1775_v62 }
 0x3ee   : > { %v1410_v28 = vpop.permute.xlu1 %1409  ;;  %v1434_v11 = vsel %vm836_vm6, %v1376_v24, %v1392_v13 }
 0x3ef   : > { %v1415_v15 = vsel %vm1112_vm13, %v1410_v28, %v1760_v41  ;;  %1488 = vmatpush.msrb.mxu2 %v1431_v46 }
 0x3f0   : > { %1627 = vmatmul.msk.f32.vlgmr.msrb.gmra.mxu2 %vm1445_vm8, %v1438_v40  ;;  %v1436_v2 = vsel %vm836_vm6, %v1405_v27, %v1415_v15 }
 0x3f1   : > { %1465 = vmatpush.msra.mxu1 %v1436_v2 }
 0x3f3   : > { %1466 = vmatpush.msra.mxu1 %v1434_v11 }
 0x3f4   : > { %v1332_v53 = vpop.permute.xlu0 %1331 }
 0x3f5   : > { %v1337_v7 = vsel %vm1034_vm3, %v1332_v53, %v1770_v9 }
 0x3f6   : > { %v1345_v21 = vpop.permute.xlu1 %1344  ;;  %v1430_v48 = vsel %vm836_vm6, %v1308_v63, %v1337_v7 }
 0x3f7   : > { %v1350_v10 = vsel %vm1048_vm2, %v1345_v21, %v1765_v3 }
 0x3f8   : > { %v1432_v57 = vsel %vm836_vm6, %v1350_v10, %v1366_v43 }
 0x3f9   : > { %1467 = vmatpush.msra.mxu1 %v1432_v57 }
 0x3fb   : > { %1468 = vmatpush.msra.mxu1 %v1430_v48 }
 0x3fc   : > { %1625 = vmatmul.msk.f32.vlgmr.msra.gmra.mxu1 %vm1445_vm8, %v1438_v40 }
 0x3fe   : > { %v1443_v4 = vpop.permute.xlu1 %1442 }
 0x473   : > { %v1490_v17 = vpop.f32.mrf.mxu2 }
 0x474   : > { %v1491_v44 = vadd.f32 %v1490_v17, %v1443_v4 }
 0x476   : > { %v1496_v14 = vmul.f32 0.2, %v1491_v44  ;;  %vm1494_vm9 = vcmp.gt.f32.partialorder %v1491_v44, 0.0 }
 0x478   : > { %v1498_v22 = vsel %vm1494_vm9, %v1491_v44, %v1496_v14 }
 0x479   : > { %v1470_v18 = vpop.f32.mrf.mxu1  ;;  %v1501_v30 = vrot.slane %v1498_v22, 4 }
 0x47a   : > { %v1471_v26 = vadd.f32 %v1470_v18, %v1443_v4 }
 0x47c   : > { %vm1493_vm10 = vcmp.gt.f32.partialorder %v1471_v26, 0.0  ;;  %v1495_v54 = vmul.f32 0.2, %v1471_v26 }
 0x47e   : > { %v1497_v1 = vsel %vm1493_vm10, %v1471_v26, %v1495_v54 }
 0x47f   : > { %v1502_v23 = vsel %vm836_vm6, %v1497_v1, %v1501_v30 }
 0x480   : > { %1504 = vst [vmem:[%s410_s29] sm:$0xff] %v1502_v23 }
 0x481 PF: > { %s22_s13 = sadd.s32 1, %s1856_s13  }
 0x482   : > { %p19_p7 = scmp.ge.s32.totalorder %s22_s13, 4  }
 0x484   :  { %21 = sbr.rel (!%p19_p7) target bundleno = 2 (0x2), region = 103 }
 0x489   :  { %1526 = vsyncpa [#allocation3], 1 }
 0x48a   :  { %1528 = vsyncpa [#allocation3 + $0x1], 1 }
 0x48b   :  { %1529 = vsyncpa [#allocation5], 1 }

</bundles_post_ra>
